<compile_context>
chip_gen: v6e
topology: v6e:2x2x1
jax: 0.10.0
libtpu: 0.0.40
codegen_flags: <defaults>
</compile_context>

<pallas_src>
import jax
import jax.numpy as jnp
from jax.experimental import pallas as pl
from jax.experimental.pallas import tpu as pltpu


def convblock_kernel(x_ref, w_ref, b_ref, o_ref, band_ref, col_ref):
    # x_ref:    (1, H, W, Cin)  f32   whole (unpadded) image, resident across row tiles
    # w_ref:    (9*Cin, Cout)   bf16  weights, row index = (3*ky + kx)*Cin + cin
    # b_ref:    (1, Cout)       f32   bias
    # o_ref:    (1, rows, W, Cout)    output row tile
    # band_ref: (rows+2, W+2, Cin) f32  scratch: zero-padded input band (ZeroPad2d halo)
    # col_ref:  (rows, W, 9*Cin) bf16   scratch: im2col patches
    rows = o_ref.shape[1]
    W = o_ref.shape[2]
    Cout = o_ref.shape[3]
    Cin = x_ref.shape[3]

    r = pl.program_id(1)
    nr = pl.num_programs(1)
    r0 = pl.multiple_of(r * rows, rows)

    # ---- build the zero-padded input band (replaces the wrapper ZeroPad2d) ----
    # Left/right halo columns are always zero.
    band_ref[:, 0:1, :] = jnp.zeros((rows + 2, 1, Cin), band_ref.dtype)
    band_ref[:, W + 1:W + 2, :] = jnp.zeros((rows + 2, 1, Cin), band_ref.dtype)

    # Top / bottom halo rows are zero only at the image border.
    @pl.when(r == 0)
    def _():
        band_ref[0:1, :, :] = jnp.zeros((1, W + 2, Cin), band_ref.dtype)

    @pl.when(r == nr - 1)
    def _():
        band_ref[rows + 1:rows + 2, :, :] = jnp.zeros((1, W + 2, Cin), band_ref.dtype)

    # Interior rows come straight from the resident image.
    band_ref[1:rows + 1, 1:W + 1, :] = x_ref[0, pl.ds(r0, rows), :, :]

    @pl.when(r > 0)
    def _():
        band_ref[0:1, 1:W + 1, :] = x_ref[0, pl.ds(r0 - 1, 1), :, :]

    @pl.when(r < nr - 1)
    def _():
        band_ref[rows + 1:rows + 2, 1:W + 1, :] = x_ref[0, pl.ds(r0 + rows, 1), :, :]

    # ---- im2col: 9 shifted windows packed along the lane axis (cast to bf16) ----
    for ky in range(3):
        for kx in range(3):
            t = 3 * ky + kx
            col_ref[:, :, t * Cin:(t + 1) * Cin] = (
                band_ref[ky:ky + rows, kx:kx + W, :].astype(col_ref.dtype))

    # ---- single bf16 MXU matmul, f32 accumulation ----
    patches = col_ref[...].reshape(rows * W, 9 * Cin)                     # bf16
    acc = jnp.dot(patches, w_ref[...], preferred_element_type=jnp.float32)
    acc = acc + b_ref[...]            # f32 bias (broadcast once)
    acc = jnp.maximum(acc, 0.0)       # nn.ReLU, f32 VPU (v5e-safe)
    o_ref[0] = acc.reshape(rows, W, Cout).astype(o_ref.dtype)


def conv_block_nhwc(x_nhwc, weight, bias, *, vmem_limit_bytes=48 * 1024 * 1024):
    """ConvBlock forward on an NHWC activation (the kernel's native layout).

    x_nhwc: (N, H, W, Cin) float32
    weight: (Cout, Cin, 3, 3) float32   (PyTorch Conv2d OIHW layout)
    bias:   (Cout,) float32
    returns (N, H, W, Cout) float32
    """
    N, H, W, Cin = x_nhwc.shape
    Cout = weight.shape[0]

    # Rows per output tile: aim for matmul M = rows*W >= 256 while dividing H.
    rows = max(1, min(H, -(-256 // W)))
    while H % rows:
        rows -= 1

    # (Cout, Cin, kh, kw) -> (kh, kw, Cin, Cout) -> (9*Cin, Cout); bf16 so the
    # weight DMA is half-size and feeds the MXU directly.
    w = jnp.transpose(weight, (2, 3, 1, 0)).reshape(9 * Cin, Cout).astype(jnp.bfloat16)
    b = bias.astype(jnp.float32).reshape(1, Cout)

    grid = (N, H // rows)

    return pl.pallas_call(
        convblock_kernel,
        out_shape=jax.ShapeDtypeStruct((N, H, W, Cout), x_nhwc.dtype),
        grid=grid,
        in_specs=[
            # Whole image per batch element; block index constant across the
            # row-tile axis so it is DMA'd once per image and stays resident.
            # TODO(synk): for large H*W*Cin on v7x (64 MiB VMEM) switch this to
            # memory_space=pl.ANY + manually double-buffered (rows+2)-row bands.
            pl.BlockSpec((1, H, W, Cin), lambda n, r: (n, 0, 0, 0)),
            pl.BlockSpec((9 * Cin, Cout), lambda n, r: (0, 0)),
            pl.BlockSpec((1, Cout), lambda n, r: (0, 0)),
        ],
        out_specs=pl.BlockSpec((1, rows, W, Cout), lambda n, r: (n, r, 0, 0)),
        scratch_shapes=[
            pltpu.VMEM((rows + 2, W + 2, Cin), jnp.float32),   # padded band
            pltpu.VMEM((rows, W, 9 * Cin), jnp.bfloat16),      # im2col patches
        ],
        compiler_params=pltpu.CompilerParams(
            dimension_semantics=("parallel", "parallel"),
            vmem_limit_bytes=vmem_limit_bytes),
    )(x_nhwc, w, b)


def conv_block(x_nchw, weight, bias):
    """PyTorch-layout adapter (NCHW in / NCHW out) around the NHWC kernel.

    The two transposes are interface glue only; in a full network the
    activations would stay NHWC end-to-end and these HBM passes disappear.
    """
    out = conv_block_nhwc(jnp.transpose(x_nchw, (0, 2, 3, 1)), weight, bias)
    return jnp.transpose(out, (0, 3, 1, 2))


def _reference(x_nchw, weight, bias):
    out = jax.lax.conv_general_dilated(
        x_nchw, weight,
        window_strides=(1, 1),
        padding=((1, 1), (1, 1)),
        dimension_numbers=("NCHW", "OIHW", "NCHW"),
    )
    out = out + bias[None, :, None, None]
    return jnp.maximum(out, 0.0)


if __name__ == "__main__":
    key = jax.random.PRNGKey(0)
    k_x, k_w, k_b = jax.random.split(key, 3)

    N, Cin, H, W = 2, 4, 16, 16
    Cout = 8

    x = jax.random.normal(k_x, (N, Cin, H, W), dtype=jnp.float32)
    # Deterministic synthetic parameters (Conv2d(in=4, out=8, kernel=3)).
    weight = jax.random.normal(k_w, (Cout, Cin, 3, 3), dtype=jnp.float32) * 0.1
    bias = jax.random.normal(k_b, (Cout,), dtype=jnp.float32) * 0.1

    out = jax.block_until_ready(conv_block(x, weight, bias))
    ref = jax.block_until_ready(_reference(x, weight, bias))

    assert out.shape == (N, Cout, H, W)
    # bf16 MXU path vs. the f32 reference -> relaxed tolerance.
    assert jnp.allclose(out, ref, atol=3e-2, rtol=3e-2), float(jnp.max(jnp.abs(out - ref)))

    print("KERNEL_OK")
</pallas_src>

<mosaic_0001>
module attributes {stable_mosaic.version = 11 : i64} {
  func.func @convblock_kernel(%arg0: i32, %arg1: i32, %arg2: memref<1x16x16x4xf32, #tpu.memory_space<vmem>>, %arg3: memref<36x8xbf16, #tpu.memory_space<vmem>>, %arg4: memref<1x8xf32, #tpu.memory_space<vmem>>, %arg5: memref<1x16x16x8xf32, #tpu.memory_space<vmem>>, %arg6: memref<18x18x4xf32, #tpu.memory_space<vmem>>, %arg7: memref<16x16x36xbf16, #tpu.memory_space<vmem>>) attributes {dimension_semantics = [#tpu.dimension_semantics<parallel>, #tpu.dimension_semantics<parallel>], iteration_bounds = array<i64: 2, 1>, scalar_prefetch = 0 : i64, scratch_operands = 2 : i64, tpu.core_type = #tpu.core_type<tc>, window_params = [{transform_indices = @transform_0, window_bounds = array<i64: 1, 16, 16, 4>}, {pipeline_mode = #tpu.pipeline_mode<synchronous>, transform_indices = @transform_1, window_bounds = array<i64: 36, 8>}, {pipeline_mode = #tpu.pipeline_mode<synchronous>, transform_indices = @transform_2, window_bounds = array<i64: 1, 8>}, {transform_indices = @transform_3, window_bounds = array<i64: 1, 16, 16, 8>}]} {
    %c16_i32 = arith.constant 16 : i32
    %0 = arith.muli %arg1, %c16_i32 : i32
    %1 = tpu.assume_multiple %0, 16 : i32
    %cst = arith.constant 0.000000e+00 : f32
    %2 = vector.broadcast %cst : f32 to vector<18x1x4xf32>
    %c0 = arith.constant 0 : index
    %c0_0 = arith.constant 0 : index
    %c0_1 = arith.constant 0 : index
    %3 = vector.load %arg6[%c0, %c0_0, %c0_1] : memref<18x18x4xf32, #tpu.memory_space<vmem>>, vector<18x1x4xf32>
    tpu.vector_store %arg6[%c0, %c0_0, %c0_1], %2 {strides = array<i32>} : memref<18x18x4xf32, #tpu.memory_space<vmem>>, vector<18x1x4xf32>,
    %cst_2 = arith.constant 0.000000e+00 : f32
    %4 = vector.broadcast %cst_2 : f32 to vector<18x1x4xf32>
    %c0_3 = arith.constant 0 : index
    %c17 = arith.constant 17 : index
    %c0_4 = arith.constant 0 : index
    %5 = vector.load %arg6[%c0_3, %c17, %c0_4] : memref<18x18x4xf32, #tpu.memory_space<vmem>>, vector<18x1x4xf32>
    tpu.vector_store %arg6[%c0_3, %c17, %c0_4], %4 {strides = array<i32>} : memref<18x18x4xf32, #tpu.memory_space<vmem>>, vector<18x1x4xf32>,
    %c0_i32 = arith.constant 0 : i32
    %6 = arith.cmpi eq, %arg1, %c0_i32 : i32
    %7 = arith.extui %6 : i1 to i32
    %c0_i32_5 = arith.constant 0 : i32
    %8 = arith.cmpi ne, %7, %c0_i32_5 : i32
    scf.if %8 {
      %cst_75 = arith.constant 0.000000e+00 : f32
      %62 = vector.broadcast %cst_75 : f32 to vector<1x18x4xf32>
      %c0_76 = arith.constant 0 : index
      %c0_77 = arith.constant 0 : index
      %c0_78 = arith.constant 0 : index
      %63 = vector.load %arg6[%c0_76, %c0_77, %c0_78] : memref<18x18x4xf32, #tpu.memory_space<vmem>>, vector<1x18x4xf32>
      tpu.vector_store %arg6[%c0_76, %c0_77, %c0_78], %62 {strides = array<i32>} : memref<18x18x4xf32, #tpu.memory_space<vmem>>, vector<1x18x4xf32>,
    } else {
    }
    %c0_i32_6 = arith.constant 0 : i32
    %9 = arith.cmpi eq, %arg1, %c0_i32_6 : i32
    %10 = arith.extui %9 : i1 to i32
    %c0_i32_7 = arith.constant 0 : i32
    %11 = arith.cmpi ne, %10, %c0_i32_7 : i32
    scf.if %11 {
      %cst_75 = arith.constant 0.000000e+00 : f32
      %62 = vector.broadcast %cst_75 : f32 to vector<1x18x4xf32>
      %c17_76 = arith.constant 17 : index
      %c0_77 = arith.constant 0 : index
      %c0_78 = arith.constant 0 : index
      %63 = vector.load %arg6[%c17_76, %c0_77, %c0_78] : memref<18x18x4xf32, #tpu.memory_space<vmem>>, vector<1x18x4xf32>
      tpu.vector_store %arg6[%c17_76, %c0_77, %c0_78], %62 {strides = array<i32>} : memref<18x18x4xf32, #tpu.memory_space<vmem>>, vector<1x18x4xf32>,
    } else {
    }
    %c0_8 = arith.constant 0 : index
    %12 = arith.index_cast %1 : i32 to index
    %c0_9 = arith.constant 0 : index
    %c0_10 = arith.constant 0 : index
    %13 = vector.load %arg2[%c0_8, %12, %c0_9, %c0_10] : memref<1x16x16x4xf32, #tpu.memory_space<vmem>>, vector<1x16x16x4xf32>
    %14 = vector.shape_cast %13 : vector<1x16x16x4xf32> to vector<16x16x4xf32>
    %c1 = arith.constant 1 : index
    %c1_11 = arith.constant 1 : index
    %c0_12 = arith.constant 0 : index
    %15 = vector.load %arg6[%c1, %c1_11, %c0_12] : memref<18x18x4xf32, #tpu.memory_space<vmem>>, vector<16x16x4xf32>
    tpu.vector_store %arg6[%c1, %c1_11, %c0_12], %14 {strides = array<i32>} : memref<18x18x4xf32, #tpu.memory_space<vmem>>, vector<16x16x4xf32>,
    %c0_i32_13 = arith.constant 0 : i32
    %16 = arith.cmpi sgt, %arg1, %c0_i32_13 : i32
    %17 = arith.extui %16 : i1 to i32
    %c0_i32_14 = arith.constant 0 : i32
    %18 = arith.cmpi ne, %17, %c0_i32_14 : i32
    scf.if %18 {
      %c1_i32 = arith.constant 1 : i32
      %62 = arith.subi %1, %c1_i32 : i32
      %c0_75 = arith.constant 0 : index
      %63 = arith.index_cast %62 : i32 to index
      %c0_76 = arith.constant 0 : index
      %c0_77 = arith.constant 0 : index
      %64 = vector.load %arg2[%c0_75, %63, %c0_76, %c0_77] : memref<1x16x16x4xf32, #tpu.memory_space<vmem>>, vector<1x1x16x4xf32>
      %65 = vector.shape_cast %64 : vector<1x1x16x4xf32> to vector<1x16x4xf32>
      %c0_78 = arith.constant 0 : index
      %c1_79 = arith.constant 1 : index
      %c0_80 = arith.constant 0 : index
      %66 = vector.load %arg6[%c0_78, %c1_79, %c0_80] : memref<18x18x4xf32, #tpu.memory_space<vmem>>, vector<1x16x4xf32>
      tpu.vector_store %arg6[%c0_78, %c1_79, %c0_80], %65 {strides = array<i32>} : memref<18x18x4xf32, #tpu.memory_space<vmem>>, vector<1x16x4xf32>,
    } else {
    }
    %c0_i32_15 = arith.constant 0 : i32
    %19 = arith.cmpi slt, %arg1, %c0_i32_15 : i32
    %20 = arith.extui %19 : i1 to i32
    %c0_i32_16 = arith.constant 0 : i32
    %21 = arith.cmpi ne, %20, %c0_i32_16 : i32
    scf.if %21 {
      %c16_i32_75 = arith.constant 16 : i32
      %62 = arith.addi %1, %c16_i32_75 : i32
      %c0_76 = arith.constant 0 : index
      %63 = arith.index_cast %62 : i32 to index
      %c0_77 = arith.constant 0 : index
      %c0_78 = arith.constant 0 : index
      %64 = vector.load %arg2[%c0_76, %63, %c0_77, %c0_78] : memref<1x16x16x4xf32, #tpu.memory_space<vmem>>, vector<1x1x16x4xf32>
      %65 = vector.shape_cast %64 : vector<1x1x16x4xf32> to vector<1x16x4xf32>
      %c17_79 = arith.constant 17 : index
      %c1_80 = arith.constant 1 : index
      %c0_81 = arith.constant 0 : index
      %66 = vector.load %arg6[%c17_79, %c1_80, %c0_81] : memref<18x18x4xf32, #tpu.memory_space<vmem>>, vector<1x16x4xf32>
      tpu.vector_store %arg6[%c17_79, %c1_80, %c0_81], %65 {strides = array<i32>} : memref<18x18x4xf32, #tpu.memory_space<vmem>>, vector<1x16x4xf32>,
    } else {
    }
    %c0_17 = arith.constant 0 : index
    %c0_18 = arith.constant 0 : index
    %c0_19 = arith.constant 0 : index
    %22 = vector.load %arg6[%c0_17, %c0_18, %c0_19] : memref<18x18x4xf32, #tpu.memory_space<vmem>>, vector<16x16x4xf32>
    %23 = arith.truncf %22 : vector<16x16x4xf32> to vector<16x16x4xbf16>
    %c0_20 = arith.constant 0 : index
    %c0_21 = arith.constant 0 : index
    %c0_22 = arith.constant 0 : index
    %24 = vector.load %arg7[%c0_20, %c0_21, %c0_22] : memref<16x16x36xbf16, #tpu.memory_space<vmem>>, vector<16x16x4xbf16>
    tpu.vector_store %arg7[%c0_20, %c0_21, %c0_22], %23 {strides = array<i32>} : memref<16x16x36xbf16, #tpu.memory_space<vmem>>, vector<16x16x4xbf16>,
    %c0_23 = arith.constant 0 : index
    %c1_24 = arith.constant 1 : index
    %c0_25 = arith.constant 0 : index
    %25 = vector.load %arg6[%c0_23, %c1_24, %c0_25] : memref<18x18x4xf32, #tpu.memory_space<vmem>>, vector<16x16x4xf32>
    %26 = arith.truncf %25 : vector<16x16x4xf32> to vector<16x16x4xbf16>
    %c0_26 = arith.constant 0 : index
    %c0_27 = arith.constant 0 : index
    %c4 = arith.constant 4 : index
    %27 = vector.load %arg7[%c0_26, %c0_27, %c4] : memref<16x16x36xbf16, #tpu.memory_space<vmem>>, vector<16x16x4xbf16>
    tpu.vector_store %arg7[%c0_26, %c0_27, %c4], %26 {strides = array<i32>} : memref<16x16x36xbf16, #tpu.memory_space<vmem>>, vector<16x16x4xbf16>,
    %c0_28 = arith.constant 0 : index
    %c2 = arith.constant 2 : index
    %c0_29 = arith.constant 0 : index
    %28 = vector.load %arg6[%c0_28, %c2, %c0_29] : memref<18x18x4xf32, #tpu.memory_space<vmem>>, vector<16x16x4xf32>
    %29 = arith.truncf %28 : vector<16x16x4xf32> to vector<16x16x4xbf16>
    %c0_30 = arith.constant 0 : index
    %c0_31 = arith.constant 0 : index
    %c8 = arith.constant 8 : index
    %30 = vector.load %arg7[%c0_30, %c0_31, %c8] : memref<16x16x36xbf16, #tpu.memory_space<vmem>>, vector<16x16x4xbf16>
    tpu.vector_store %arg7[%c0_30, %c0_31, %c8], %29 {strides = array<i32>} : memref<16x16x36xbf16, #tpu.memory_space<vmem>>, vector<16x16x4xbf16>,
    %c1_32 = arith.constant 1 : index
    %c0_33 = arith.constant 0 : index
    %c0_34 = arith.constant 0 : index
    %31 = vector.load %arg6[%c1_32, %c0_33, %c0_34] : memref<18x18x4xf32, #tpu.memory_space<vmem>>, vector<16x16x4xf32>
    %32 = arith.truncf %31 : vector<16x16x4xf32> to vector<16x16x4xbf16>
    %c0_35 = arith.constant 0 : index
    %c0_36 = arith.constant 0 : index
    %c12 = arith.constant 12 : index
    %33 = vector.load %arg7[%c0_35, %c0_36, %c12] : memref<16x16x36xbf16, #tpu.memory_space<vmem>>, vector<16x16x4xbf16>
    tpu.vector_store %arg7[%c0_35, %c0_36, %c12], %32 {strides = array<i32>} : memref<16x16x36xbf16, #tpu.memory_space<vmem>>, vector<16x16x4xbf16>,
    %c1_37 = arith.constant 1 : index
    %c1_38 = arith.constant 1 : index
    %c0_39 = arith.constant 0 : index
    %34 = vector.load %arg6[%c1_37, %c1_38, %c0_39] : memref<18x18x4xf32, #tpu.memory_space<vmem>>, vector<16x16x4xf32>
    %35 = arith.truncf %34 : vector<16x16x4xf32> to vector<16x16x4xbf16>
    %c0_40 = arith.constant 0 : index
    %c0_41 = arith.constant 0 : index
    %c16 = arith.constant 16 : index
    %36 = vector.load %arg7[%c0_40, %c0_41, %c16] : memref<16x16x36xbf16, #tpu.memory_space<vmem>>, vector<16x16x4xbf16>
    tpu.vector_store %arg7[%c0_40, %c0_41, %c16], %35 {strides = array<i32>} : memref<16x16x36xbf16, #tpu.memory_space<vmem>>, vector<16x16x4xbf16>,
    %c1_42 = arith.constant 1 : index
    %c2_43 = arith.constant 2 : index
    %c0_44 = arith.constant 0 : index
    %37 = vector.load %arg6[%c1_42, %c2_43, %c0_44] : memref<18x18x4xf32, #tpu.memory_space<vmem>>, vector<16x16x4xf32>
    %38 = arith.truncf %37 : vector<16x16x4xf32> to vector<16x16x4xbf16>
    %c0_45 = arith.constant 0 : index
    %c0_46 = arith.constant 0 : index
    %c20 = arith.constant 20 : index
    %39 = vector.load %arg7[%c0_45, %c0_46, %c20] : memref<16x16x36xbf16, #tpu.memory_space<vmem>>, vector<16x16x4xbf16>
    tpu.vector_store %arg7[%c0_45, %c0_46, %c20], %38 {strides = array<i32>} : memref<16x16x36xbf16, #tpu.memory_space<vmem>>, vector<16x16x4xbf16>,
    %c2_47 = arith.constant 2 : index
    %c0_48 = arith.constant 0 : index
    %c0_49 = arith.constant 0 : index
    %40 = vector.load %arg6[%c2_47, %c0_48, %c0_49] : memref<18x18x4xf32, #tpu.memory_space<vmem>>, vector<16x16x4xf32>
    %41 = arith.truncf %40 : vector<16x16x4xf32> to vector<16x16x4xbf16>
    %c0_50 = arith.constant 0 : index
    %c0_51 = arith.constant 0 : index
    %c24 = arith.constant 24 : index
    %42 = vector.load %arg7[%c0_50, %c0_51, %c24] : memref<16x16x36xbf16, #tpu.memory_space<vmem>>, vector<16x16x4xbf16>
    tpu.vector_store %arg7[%c0_50, %c0_51, %c24], %41 {strides = array<i32>} : memref<16x16x36xbf16, #tpu.memory_space<vmem>>, vector<16x16x4xbf16>,
    %c2_52 = arith.constant 2 : index
    %c1_53 = arith.constant 1 : index
    %c0_54 = arith.constant 0 : index
    %43 = vector.load %arg6[%c2_52, %c1_53, %c0_54] : memref<18x18x4xf32, #tpu.memory_space<vmem>>, vector<16x16x4xf32>
    %44 = arith.truncf %43 : vector<16x16x4xf32> to vector<16x16x4xbf16>
    %c0_55 = arith.constant 0 : index
    %c0_56 = arith.constant 0 : index
    %c28 = arith.constant 28 : index
    %45 = vector.load %arg7[%c0_55, %c0_56, %c28] : memref<16x16x36xbf16, #tpu.memory_space<vmem>>, vector<16x16x4xbf16>
    tpu.vector_store %arg7[%c0_55, %c0_56, %c28], %44 {strides = array<i32>} : memref<16x16x36xbf16, #tpu.memory_space<vmem>>, vector<16x16x4xbf16>,
    %c2_57 = arith.constant 2 : index
    %c2_58 = arith.constant 2 : index
    %c0_59 = arith.constant 0 : index
    %46 = vector.load %arg6[%c2_57, %c2_58, %c0_59] : memref<18x18x4xf32, #tpu.memory_space<vmem>>, vector<16x16x4xf32>
    %47 = arith.truncf %46 : vector<16x16x4xf32> to vector<16x16x4xbf16>
    %c0_60 = arith.constant 0 : index
    %c0_61 = arith.constant 0 : index
    %c32 = arith.constant 32 : index
    %48 = vector.load %arg7[%c0_60, %c0_61, %c32] : memref<16x16x36xbf16, #tpu.memory_space<vmem>>, vector<16x16x4xbf16>
    tpu.vector_store %arg7[%c0_60, %c0_61, %c32], %47 {strides = array<i32>} : memref<16x16x36xbf16, #tpu.memory_space<vmem>>, vector<16x16x4xbf16>,
    %c0_62 = arith.constant 0 : index
    %c0_63 = arith.constant 0 : index
    %c0_64 = arith.constant 0 : index
    %49 = vector.load %arg7[%c0_62, %c0_63, %c0_64] : memref<16x16x36xbf16, #tpu.memory_space<vmem>>, vector<16x16x36xbf16>
    %50 = vector.shape_cast %49 : vector<16x16x36xbf16> to vector<256x36xbf16>
    %c0_65 = arith.constant 0 : index
    %c0_66 = arith.constant 0 : index
    %51 = vector.load %arg3[%c0_65, %c0_66] : memref<36x8xbf16, #tpu.memory_space<vmem>>, vector<36x8xbf16>
    %cst_67 = arith.constant dense<0.000000e+00> : vector<256x8xf32>
    %52 = tpu.matmul %50, %51, %cst_67 {dimension_numbers = #tpu.dot_dimension_numbers<[1], [0], [0], [1], [0, 0, 1, 1], [], []>} : vector<256x36xbf16>, vector<36x8xbf16>, vector<256x8xf32> -> vector<256x8xf32>
    %c0_68 = arith.constant 0 : index
    %c0_69 = arith.constant 0 : index
    %53 = vector.load %arg4[%c0_68, %c0_69] : memref<1x8xf32, #tpu.memory_space<vmem>>, vector<1x8xf32>
    %54 = vector.broadcast %53 : vector<1x8xf32> to vector<256x8xf32>
    %55 = arith.addf %52, %54 : vector<256x8xf32>
    %cst_70 = arith.constant 0.000000e+00 : f32
    %56 = vector.broadcast %cst_70 : f32 to vector<256x8xf32>
    %57 = arith.maximumf %55, %56 : vector<256x8xf32>
    %58 = vector.shape_cast %57 : vector<256x8xf32> to vector<16x16x8xf32>
    %c0_71 = arith.constant 0 : index
    %c0_72 = arith.constant 0 : index
    %c0_73 = arith.constant 0 : index
    %c0_74 = arith.constant 0 : index
    %59 = vector.load %arg5[%c0_71, %c0_72, %c0_73, %c0_74] : memref<1x16x16x8xf32, #tpu.memory_space<vmem>>, vector<1x16x16x8xf32>
    %60 = vector.shape_cast %59 : vector<1x16x16x8xf32> to vector<16x16x8xf32>
    %61 = vector.shape_cast %58 : vector<16x16x8xf32> to vector<1x16x16x8xf32>
    tpu.vector_store %arg5[%c0_71, %c0_72, %c0_73, %c0_74], %61 {strides = array<i32>} : memref<1x16x16x8xf32, #tpu.memory_space<vmem>>, vector<1x16x16x8xf32>,
    return
  }
  func.func @transform_0(%arg0: i32, %arg1: i32) -> (i32, i32, i32, i32) {
    %c0_i32 = arith.constant 0 : i32
    %c0_i32_0 = arith.constant 0 : i32
    %c0_i32_1 = arith.constant 0 : i32
    %c0_i32_2 = arith.constant 0 : i32
    return %arg0, %c0_i32, %c0_i32_0, %c0_i32_1 : i32, i32, i32, i32
  }
  func.func @transform_1(%arg0: i32, %arg1: i32) -> (i32, i32) {
    %c0_i32 = arith.constant 0 : i32
    %c0_i32_0 = arith.constant 0 : i32
    %c0_i32_1 = arith.constant 0 : i32
    return %c0_i32, %c0_i32_0 : i32, i32
  }
  func.func @transform_2(%arg0: i32, %arg1: i32) -> (i32, i32) {
    %c0_i32 = arith.constant 0 : i32
    %c0_i32_0 = arith.constant 0 : i32
    %c0_i32_1 = arith.constant 0 : i32
    return %c0_i32, %c0_i32_0 : i32, i32
  }
  func.func @transform_3(%arg0: i32, %arg1: i32) -> (i32, i32, i32, i32) {
    %c0_i32 = arith.constant 0 : i32
    %c0_i32_0 = arith.constant 0 : i32
    %c0_i32_1 = arith.constant 0 : i32
    return %arg0, %arg1, %c0_i32, %c0_i32_0 : i32, i32, i32, i32
  }
}

</mosaic_0001>

<bundles_post_ra>
// kernel: tpu_custom_call.1
= control target key start
LH: loop header
LB: loop body
LE: loop exit
PB: predicated region body
PF: predicated region fallthrough
CT: control target
= control target key end

     0   :  { %s3901_s12 = smov 0   ;;  %s3903_s13 = smov 0   ;;  %s5039_s0 = inlined_call_operand.vmem [shape: f32[2,16,16,4], index: 0, kind: input, shape index: {}]   ;;  %s5040_s1 = inlined_call_operand.vmem [shape: bf16[36,8], index: 1, kind: input, shape index: {}]   ;;  %s5041_s2 = inlined_call_operand.vmem [shape: f32[1,8], index: 2, kind: input, shape index: {}]   ;;  %s5042_s3 = inlined_call_operand.vmem [shape: f32[2,16,16,8], index: 3, kind: output, shape index: {}]  }
   0x1   :  { %s3905_s14 = smov 0  }
   0x2 LB: > { %s25_s15 = sadd.s32 1, %s3866_s13  ;;  %p3106_p0 = scmp.ge.s32.totalorder %s3870_s14, 1  ;;  %s3870_s14 = sphi %s3905_s14, %s13_s14   ;;  %s3866_s13 = sphi %s3903_s13, %s5044_s13   ;;  %s3862_s12 = sphi %s3901_s12, %s5043_s12  }
   0x3   : > { %p27_p1 = scmp.ge.s32.totalorder %s25_s15, 2  ;;  %p151_p2 = scmp.lt.s32.totalorder %s3870_s14, 3 }
   0x5   : > { %s5046_s15 = smov (%p27_p1, %s25_s15), 0  ;;  %p152_p3 = pnand %p3106_p0, %p151_p2 }
   0x6   : > { %p180_p4 = scmp.lt.s32.totalorder (!%p152_p3), %s3862_s12, 1  ;;  %s3873_s20 = smov (!%p152_p3), 4  }
   0x7   : > { %155 = sbr.rel (%p152_p3) target bundleno = 879 (0x36f), region = 32  ;;  %s3874_s21 = smov (!%p152_p3), 8  }
   0x8   : > { %s3875_s22 = smov (!%p152_p3), 12   ;;  %s3876_s23 = smov (!%p152_p3), 16  }
   0x9   : > { %s3877_s24 = smov (!%p152_p3), 20   ;;  %s3878_s25 = smov (!%p152_p3), 24  }
   0xa   : > { %s3879_s26 = smov (!%p152_p3), 28   ;;  %s3880_s4 = smov (!%p152_p3), 32  }
   0xc   : > { %vm198_vm0 = vcmask 24576   ;;  %vm239_vm1 = vcmask 31744   ;;  %vm242_vm2 = vcmask 25600   ;;  %v3872_v0 = vmov 0.0   ;;  %s5048_s12 = smov (!%p180_p4, %s3862_s12), 1 }
   0xd   : > { %199 = vst.msk [vmem:[#allocation2] sm:$0x1] %vm198_vm0, %v3872_v0  ;;  %200 = vst.msk [vmem:[#allocation2 + $0x18] sm:$0x1] %vm198_vm0, %v3872_v0  ;;  %s3441_s16 = sshll.u32 %s5048_s12, 8  ;;  %vm499_vm3 = vcmask 27648  }
   0xe   : > { %241 = vst.msk [vmem:[#allocation2 + $0x8] sm:$0xff] %vm239_vm1, %v3872_v0  ;;  %246 = vst.msk [vmem:[#allocation2 + $0x1a0] sm:$0xff] %vm239_vm1, %v3872_v0  ;;  %s3975_s19 = scalar_lea.vmem %s5039_s0, %s3441_s16  ;;  %vm756_vm4 = vcmask 60448   ;;  %vm1013_vm5 = vcmask 93248   ;;  %vm1270_vm6 = vcmask 126048   ;;  %vm2777_vm7 = vcmask 1041408   ;;  %s4914_s11 = scalar_lea.vmem %s5042_s3, %s3441_s16 }
   0xf   : > { %201 = vst.msk [vmem:[#allocation2 + $0x30] sm:$0x1] %vm198_vm0, %v3872_v0  ;;  %202 = vst.msk [vmem:[#allocation2 + $0x48] sm:$0x1] %vm198_vm0, %v3872_v0  ;;  %v250_v1 = vld [vmem:[%s3975_s19] sm:$0xff]  ;;  %v251_v2 = vld [vmem:[%s3975_s19 + $0x8] sm:$0xff] }
  0x10   : > { %203 = vst.msk [vmem:[#allocation2 + $0x60] sm:$0x1] %vm198_vm0, %v3872_v0  ;;  %204 = vst.msk [vmem:[#allocation2 + $0x78] sm:$0x1] %vm198_vm0, %v3872_v0  ;;  %v252_v3 = vld [vmem:[%s3975_s19 + $0x10] sm:$0xff]  ;;  %v253_v4 = vld [vmem:[%s3975_s19 + $0x18] sm:$0xff] }
  0x11   : > { %205 = vst.msk [vmem:[#allocation2 + $0x90] sm:$0x1] %vm198_vm0, %v3872_v0  ;;  %206 = vst.msk [vmem:[#allocation2 + $0xa8] sm:$0x1] %vm198_vm0, %v3872_v0  ;;  %v254_v5 = vld [vmem:[%s3975_s19 + $0x20] sm:$0xff]  ;;  %v255_v6 = vld [vmem:[%s3975_s19 + $0x28] sm:$0xff] }
  0x12   : > { %207 = vst.msk [vmem:[#allocation2 + $0xc0] sm:$0x1] %vm198_vm0, %v3872_v0  ;;  %208 = vst.msk [vmem:[#allocation2 + $0xd8] sm:$0x1] %vm198_vm0, %v3872_v0  ;;  %v256_v7 = vld [vmem:[%s3975_s19 + $0x30] sm:$0xff]  ;;  %v257_v8 = vld [vmem:[%s3975_s19 + $0x38] sm:$0xff] }
  0x13   : > { %209 = vst.msk [vmem:[#allocation2 + $0xf0] sm:$0x1] %vm198_vm0, %v3872_v0  ;;  %210 = vst.msk [vmem:[#allocation2 + $0x108] sm:$0x1] %vm198_vm0, %v3872_v0  ;;  %v258_v9 = vld [vmem:[%s3975_s19 + $0x40] sm:$0xff]  ;;  %v259_v12 = vld [vmem:[%s3975_s19 + $0x48] sm:$0xff] }
  0x14   : > { %211 = vst.msk [vmem:[#allocation2 + $0x120] sm:$0x1] %vm198_vm0, %v3872_v0  ;;  %212 = vst.msk [vmem:[#allocation2 + $0x138] sm:$0x1] %vm198_vm0, %v3872_v0  ;;  %v260_v14 = vld [vmem:[%s3975_s19 + $0x50] sm:$0xff]  ;;  %v261_v15 = vld [vmem:[%s3975_s19 + $0x58] sm:$0xff] }
  0x15   : > { %213 = vst.msk [vmem:[#allocation2 + $0x150] sm:$0x1] %vm198_vm0, %v3872_v0  ;;  %214 = vst.msk [vmem:[#allocation2 + $0x168] sm:$0x1] %vm198_vm0, %v3872_v0  ;;  %v262_v16 = vld [vmem:[%s3975_s19 + $0x60] sm:$0xff]  ;;  %v263_v17 = vld [vmem:[%s3975_s19 + $0x68] sm:$0xff] }
  0x16   : > { %215 = vst.msk [vmem:[#allocation2 + $0x180] sm:$0x1] %vm198_vm0, %v3872_v0  ;;  %216 = vst.msk [vmem:[#allocation2 + $0x198] sm:$0x1] %vm198_vm0, %v3872_v0  ;;  %v264_v18 = vld [vmem:[%s3975_s19 + $0x70] sm:$0xff]  ;;  %v265_v19 = vld [vmem:[%s3975_s19 + $0x78] sm:$0xff] }
  0x17   : > { %217 = vst.msk [vmem:[#allocation2 + $0x11] sm:$0x1] %vm198_vm0, %v3872_v0  ;;  %218 = vst.msk [vmem:[#allocation2 + $0x29] sm:$0x1] %vm198_vm0, %v3872_v0  ;;  %v266_v21 = vld [vmem:[%s3975_s19 + $0x80] sm:$0xff]  ;;  %v267_v22 = vld [vmem:[%s3975_s19 + $0x88] sm:$0xff] }
  0x18   : > { %219 = vst.msk [vmem:[#allocation2 + $0x41] sm:$0x1] %vm198_vm0, %v3872_v0  ;;  %220 = vst.msk [vmem:[#allocation2 + $0x59] sm:$0x1] %vm198_vm0, %v3872_v0  ;;  %v268_v23 = vld [vmem:[%s3975_s19 + $0x90] sm:$0xff]  ;;  %v269_v24 = vld [vmem:[%s3975_s19 + $0x98] sm:$0xff] }
  0x19   : > { %221 = vst.msk [vmem:[#allocation2 + $0x71] sm:$0x1] %vm198_vm0, %v3872_v0  ;;  %222 = vst.msk [vmem:[#allocation2 + $0x89] sm:$0x1] %vm198_vm0, %v3872_v0  ;;  %v270_v25 = vld [vmem:[%s3975_s19 + $0xa0] sm:$0xff]  ;;  %v271_v26 = vld [vmem:[%s3975_s19 + $0xa8] sm:$0xff] }
  0x1a   : > { %223 = vst.msk [vmem:[#allocation2 + $0xa1] sm:$0x1] %vm198_vm0, %v3872_v0  ;;  %224 = vst.msk [vmem:[#allocation2 + $0xb9] sm:$0x1] %vm198_vm0, %v3872_v0  ;;  %v272_v34 = vld [vmem:[%s3975_s19 + $0xb0] sm:$0xff]  ;;  %v273_v35 = vld [vmem:[%s3975_s19 + $0xb8] sm:$0xff] }
  0x1b   : > { %225 = vst.msk [vmem:[#allocation2 + $0xd1] sm:$0x1] %vm198_vm0, %v3872_v0  ;;  %226 = vst.msk [vmem:[#allocation2 + $0xe9] sm:$0x1] %vm198_vm0, %v3872_v0  ;;  %v274_v41 = vld [vmem:[%s3975_s19 + $0xc0] sm:$0xff]  ;;  %v275_v42 = vld [vmem:[%s3975_s19 + $0xc8] sm:$0xff] }
  0x1c   : > { %227 = vst.msk [vmem:[#allocation2 + $0x101] sm:$0x1] %vm198_vm0, %v3872_v0  ;;  %228 = vst.msk [vmem:[#allocation2 + $0x119] sm:$0x1] %vm198_vm0, %v3872_v0  ;;  %v276_v43 = vld [vmem:[%s3975_s19 + $0xd0] sm:$0xff]  ;;  %v277_v44 = vld [vmem:[%s3975_s19 + $0xd8] sm:$0xff] }
  0x1d   : > { %229 = vst.msk [vmem:[#allocation2 + $0x131] sm:$0x1] %vm198_vm0, %v3872_v0  ;;  %230 = vst.msk [vmem:[#allocation2 + $0x149] sm:$0x1] %vm198_vm0, %v3872_v0  ;;  %v278_v45 = vld [vmem:[%s3975_s19 + $0xe0] sm:$0xff]  ;;  %v279_v46 = vld [vmem:[%s3975_s19 + $0xe8] sm:$0xff] }
  0x1e   : > { %231 = vst.msk [vmem:[#allocation2 + $0x161] sm:$0x1] %vm198_vm0, %v3872_v0  ;;  %232 = vst.msk [vmem:[#allocation2 + $0x179] sm:$0x1] %vm198_vm0, %v3872_v0  ;;  %vm1527_vm8 = vcmask 158848   ;;  %vm1784_vm9 = vcmask 191648  }
  0x1f   : > { %233 = vst.msk [vmem:[#allocation2 + $0x191] sm:$0x1] %vm198_vm0, %v3872_v0  ;;  %234 = vst.msk [vmem:[#allocation2 + $0x1a9] sm:$0x1] %vm198_vm0, %v3872_v0  ;;  %vm2042_vm10 = vcmask 224448   ;;  %vm2299_vm11 = vcmask 257248  }
  0x20   : > { %240 = vst.msk [vmem:[#allocation2] sm:$0xff] %vm239_vm1, %v3872_v0  ;;  %245 = vst.msk [vmem:[#allocation2 + $0x198] sm:$0xff] %vm239_vm1, %v3872_v0  ;;  %vm2556_vm12 = vcmask 290048   ;;  %vm2728_vm13 = vcmask 293888   ;;  %vm2974_vm14 = vcmask 64512  }
  0x21   : > { %243 = vst.msk [vmem:[#allocation2 + $0x10] sm:$0x3] %vm242_vm2, %v3872_v0  ;;  %247 = vst.msk [vmem:[#allocation2 + $0x1a8] sm:$0x3] %vm242_vm2, %v3872_v0  ;;  %v340_v0 = vld [vmem:[#allocation2 + $0x8] sm:$0xff] }
  0x22   : > { %284 = vst.msk [vmem:[#allocation2 + $0x19] sm:$0xff] %vm239_vm1, %v250_v1  ;;  %285 = vst.msk [vmem:[#allocation2 + $0x21] sm:$0xff] %vm239_vm1, %v251_v2 }
  0x23   : > { %286 = vst.msk [vmem:[#allocation2 + $0x31] sm:$0xff] %vm239_vm1, %v252_v3  ;;  %287 = vst.msk [vmem:[#allocation2 + $0x39] sm:$0xff] %vm239_vm1, %v253_v4  ;;  %v3444_v3 = vpack.c.bf16 %v340_v0, %v340_v0 }
  0x24   : > { %288 = vst.msk [vmem:[#allocation2 + $0x49] sm:$0xff] %vm239_vm1, %v254_v5  ;;  %289 = vst.msk [vmem:[#allocation2 + $0x51] sm:$0xff] %vm239_vm1, %v255_v6 }
  0x25   : > { %290 = vst.msk [vmem:[#allocation2 + $0x61] sm:$0xff] %vm239_vm1, %v256_v7  ;;  %291 = vst.msk [vmem:[#allocation2 + $0x69] sm:$0xff] %vm239_vm1, %v257_v8 }
  0x26   : > { %292 = vst.msk [vmem:[#allocation2 + $0x79] sm:$0xff] %vm239_vm1, %v258_v9  ;;  %293 = vst.msk [vmem:[#allocation2 + $0x81] sm:$0xff] %vm239_vm1, %v259_v12 }
  0x27   : > { %v532_v10 = vld [vmem:[#allocation2 + $0x1] sm:$0xff]  ;;  %294 = vst.msk [vmem:[#allocation2 + $0x91] sm:$0xff] %vm239_vm1, %v260_v14  ;;  %295 = vst.msk [vmem:[#allocation2 + $0x99] sm:$0xff] %vm239_vm1, %v261_v15 }
  0x28   : > { %v533_v11 = vld [vmem:[#allocation2 + $0x9] sm:$0xff]  ;;  %v3475_v13 = vpack.c.bf16 %v532_v10, %v532_v10  ;;  %296 = vst.msk [vmem:[#allocation2 + $0xa9] sm:$0xff] %vm239_vm1, %v262_v16  ;;  %297 = vst.msk [vmem:[#allocation2 + $0xb1] sm:$0xff] %vm239_vm1, %v263_v17  ;;  %v339_v59 = vld [vmem:[#allocation2] sm:$0xff] }
  0x29   : > { %v3476_v20 = vpack.c.bf16 %v533_v11, %v533_v11  ;;  %298 = vst.msk [vmem:[#allocation2 + $0xc1] sm:$0xff] %vm239_vm1, %v264_v18  ;;  %299 = vst.msk [vmem:[#allocation2 + $0xc9] sm:$0xff] %vm239_vm1, %v265_v19  ;;  %v534_v27 = vld [vmem:[#allocation2 + $0x19] sm:$0xff]  ;;  %v535_v28 = vld [vmem:[#allocation2 + $0x21] sm:$0xff]  ;;  %v3443_v62 = vpack.c.bf16 %v339_v59, %v339_v59 }
  0x2a   : > { %660 = vrot.lane.b32.xlu0 %v3475_v13, %s3873_s20  ;;  %300 = vst.msk [vmem:[#allocation2 + $0xd9] sm:$0xff] %vm239_vm1, %v266_v21  ;;  %301 = vst.msk [vmem:[#allocation2 + $0xe1] sm:$0xff] %vm239_vm1, %v267_v22  ;;  %v536_v29 = vld [vmem:[#allocation2 + $0x31] sm:$0xff]  ;;  %v3477_v30 = vpack.c.bf16 %v534_v27, %v534_v27  ;;  %v3478_v32 = vpack.c.bf16 %v535_v28, %v535_v28  ;;  %v537_v36 = vld [vmem:[#allocation2 + $0x39] sm:$0xff] }
  0x2b   : > { %302 = vst.msk [vmem:[#allocation2 + $0xf1] sm:$0xff] %vm239_vm1, %v268_v23  ;;  %303 = vst.msk [vmem:[#allocation2 + $0xf9] sm:$0xff] %vm239_vm1, %v269_v24  ;;  %v3479_v31 = vpack.c.bf16 %v536_v29, %v536_v29  ;;  %v538_v33 = vld [vmem:[#allocation2 + $0x49] sm:$0xff]  ;;  %v3480_v38 = vpack.c.bf16 %v537_v36, %v537_v36  ;;  %v539_v39 = vld [vmem:[#allocation2 + $0x51] sm:$0xff] }
  0x2c   : > { %304 = vst.msk [vmem:[#allocation2 + $0x109] sm:$0xff] %vm239_vm1, %v270_v25  ;;  %305 = vst.msk [vmem:[#allocation2 + $0x111] sm:$0xff] %vm239_vm1, %v271_v26  ;;  %664 = vrot.lane.b32.xlu1 %v3477_v30, %s3873_s20  ;;  %v3481_v37 = vpack.c.bf16 %v538_v33, %v538_v33  ;;  %v540_v40 = vld [vmem:[#allocation2 + $0x61] sm:$0xff]  ;;  %v3482_v48 = vpack.c.bf16 %v539_v39, %v539_v39  ;;  %v541_v50 = vld [vmem:[#allocation2 + $0x69] sm:$0xff] }
  0x2d   : > { %306 = vst.msk [vmem:[#allocation2 + $0x121] sm:$0xff] %vm239_vm1, %v272_v34  ;;  %307 = vst.msk [vmem:[#allocation2 + $0x129] sm:$0xff] %vm239_vm1, %v273_v35  ;;  %v3483_v47 = vpack.c.bf16 %v540_v40, %v540_v40  ;;  %v542_v49 = vld [vmem:[#allocation2 + $0x79] sm:$0xff]  ;;  %v3484_v52 = vpack.c.bf16 %v541_v50, %v541_v50  ;;  %v543_v54 = vld [vmem:[#allocation2 + $0x81] sm:$0xff] }
  0x2e   : > { %662 = vrot.lane.b32.xlu0 %v3476_v20, %s3873_s20  ;;  %308 = vst.msk [vmem:[#allocation2 + $0x139] sm:$0xff] %vm239_vm1, %v274_v41  ;;  %309 = vst.msk [vmem:[#allocation2 + $0x141] sm:$0xff] %vm239_vm1, %v275_v42  ;;  %v3485_v51 = vpack.c.bf16 %v542_v49, %v542_v49  ;;  %v544_v53 = vld [vmem:[#allocation2 + $0x91] sm:$0xff]  ;;  %v3486_v56 = vpack.c.bf16 %v543_v54, %v543_v54  ;;  %v545_v58 = vld [vmem:[#allocation2 + $0x99] sm:$0xff] }
  0x2f   : > { %310 = vst.msk [vmem:[#allocation2 + $0x151] sm:$0xff] %vm239_vm1, %v276_v43  ;;  %311 = vst.msk [vmem:[#allocation2 + $0x159] sm:$0xff] %vm239_vm1, %v277_v44  ;;  %v3487_v55 = vpack.c.bf16 %v544_v53, %v544_v53  ;;  %v546_v57 = vld [vmem:[#allocation2 + $0xa9] sm:$0xff]  ;;  %v341_v60 = vld [vmem:[#allocation2 + $0x18] sm:$0xff]  ;;  %v3488_v1 = vpack.c.bf16 %v545_v58, %v545_v58 }
  0x30   : > { %666 = vrot.lane.b32.xlu1 %v3478_v32, %s3873_s20  ;;  %312 = vst.msk [vmem:[#allocation2 + $0x169] sm:$0xff] %vm239_vm1, %v278_v45  ;;  %313 = vst.msk [vmem:[#allocation2 + $0x171] sm:$0xff] %vm239_vm1, %v279_v46  ;;  %v3489_v61 = vpack.c.bf16 %v546_v57, %v546_v57  ;;  %v4049_v63 = vpack.c.bf16 %v341_v60, %v341_v60  ;;  %v548_v2 = vld [vmem:[#allocation2 + $0xc1] sm:$0xff]  ;;  %v547_v5 = vld [vmem:[#allocation2 + $0xb1] sm:$0xff] }
  0x31   : > { %v342_v4 = vld [vmem:[#allocation2 + $0x20] sm:$0xff]  ;;  %500 = vst.msk [vmem:[#allocation3] sm:$0xf] %vm499_vm3, %v3443_v62  ;;  %v343_v7 = vld [vmem:[#allocation2 + $0x30] sm:$0xff]  ;;  %v344_v8 = vld [vmem:[#allocation2 + $0x38] sm:$0xff]  ;;  %v3491_v14 = vpack.c.bf16 %v548_v2, %v548_v2  ;;  %v3490_v21 = vpack.c.bf16 %v547_v5, %v547_v5 }
  0x32   : > { %668 = vrot.lane.b32.xlu0 %v3479_v31, %s3873_s20  ;;  %502 = vst.msk [vmem:[#allocation3 + $0x8] sm:$0xf] %vm499_vm3, %v4049_v63  ;;  %v4055_v6 = vpack.c.bf16 %v342_v4, %v342_v4  ;;  %v550_v9 = vld [vmem:[#allocation2 + $0xd9] sm:$0xff]  ;;  %501 = vst.msk [vmem:[#allocation3 + $0x4] sm:$0xf] %vm499_vm3, %v3444_v3  ;;  %v4058_v10 = vpack.c.bf16 %v343_v7, %v343_v7  ;;  %v4060_v11 = vpack.c.bf16 %v344_v8, %v344_v8  ;;  %v345_v12 = vld [vmem:[#allocation2 + $0x48] sm:$0xff] }
  0x33   : > { %v346_v13 = vld [vmem:[#allocation2 + $0x50] sm:$0xff]  ;;  %v4067_v16 = vpack.c.bf16 %v345_v12, %v345_v12  ;;  %v347_v18 = vld [vmem:[#allocation2 + $0x60] sm:$0xff]  ;;  %v348_v19 = vld [vmem:[#allocation2 + $0x68] sm:$0xff]  ;;  %v4105_v40 = vpack.c.bf16 %v550_v9, %v550_v9 }
  0x34   : > { %670 = vrot.lane.b32.xlu1 %v3480_v38, %s3873_s20  ;;  %v4063_v15 = vld [vmem:[#allocation2 + $0xc9] sm:$0xff]  ;;  %503 = vst.msk [vmem:[#allocation3 + $0xc] sm:$0xf] %vm499_vm3, %v4055_v6  ;;  %v4069_v17 = vpack.c.bf16 %v346_v13, %v346_v13  ;;  %v349_v20 = vld [vmem:[#allocation2 + $0x78] sm:$0xff]  ;;  %504 = vst.msk [vmem:[#allocation3 + $0x10] sm:$0xf] %vm499_vm3, %v4058_v10  ;;  %v4076_v22 = vpack.c.bf16 %v347_v18, %v347_v18  ;;  %v4078_v23 = vpack.c.bf16 %v348_v19, %v348_v19 }
  0x35   : > { %505 = vst.msk [vmem:[#allocation3 + $0x14] sm:$0xf] %vm499_vm3, %v4060_v11  ;;  %v4080_v24 = vpack.c.bf16 %v349_v20, %v349_v20  ;;  %v350_v25 = vld [vmem:[#allocation2 + $0x80] sm:$0xff]  ;;  %v351_v26 = vld [vmem:[#allocation2 + $0x90] sm:$0xff]  ;;  %v352_v27 = vld [vmem:[#allocation2 + $0x98] sm:$0xff] }
  0x36   : > { %672 = vrot.lane.b32.xlu0 %v3481_v37, %s3873_s20  ;;  %506 = vst.msk [vmem:[#allocation3 + $0x18] sm:$0xf] %vm499_vm3, %v4067_v16  ;;  %507 = vst.msk [vmem:[#allocation3 + $0x1c] sm:$0xf] %vm499_vm3, %v4069_v17  ;;  %v4086_v28 = vpack.c.bf16 %v350_v25, %v350_v25  ;;  %v4088_v29 = vpack.c.bf16 %v351_v26, %v351_v26  ;;  %v4090_v30 = vpack.c.bf16 %v352_v27, %v352_v27  ;;  %v353_v31 = vld [vmem:[#allocation2 + $0xa8] sm:$0xff]  ;;  %v354_v32 = vld [vmem:[#allocation2 + $0xb0] sm:$0xff] }
  0x37   : > { %v355_v33 = vld [vmem:[#allocation2 + $0xc0] sm:$0xff]  ;;  %508 = vst.msk [vmem:[#allocation3 + $0x20] sm:$0xf] %vm499_vm3, %v4076_v22  ;;  %509 = vst.msk [vmem:[#allocation3 + $0x24] sm:$0xf] %vm499_vm3, %v4078_v23  ;;  %v4098_v34 = vpack.c.bf16 %v353_v31, %v353_v31  ;;  %v4100_v35 = vpack.c.bf16 %v354_v32, %v354_v32  ;;  %v356_v37 = vld [vmem:[#allocation2 + $0xc8] sm:$0xff] }
  0x38   : > { %674 = vrot.lane.b32.xlu1 %v3482_v48, %s3873_s20  ;;  %510 = vst.msk [vmem:[#allocation3 + $0x28] sm:$0xf] %vm499_vm3, %v4080_v24  ;;  %v4102_v36 = vpack.c.bf16 %v355_v33, %v355_v33  ;;  %v357_v38 = vld [vmem:[#allocation2 + $0xd8] sm:$0xff]  ;;  %v358_v39 = vld [vmem:[#allocation2 + $0xe0] sm:$0xff]  ;;  %511 = vst.msk [vmem:[#allocation3 + $0x2c] sm:$0xf] %vm499_vm3, %v4086_v28  ;;  %v4113_v41 = vpack.c.bf16 %v356_v37, %v356_v37 }
  0x39   : > { %512 = vst.msk [vmem:[#allocation3 + $0x30] sm:$0xf] %vm499_vm3, %v4088_v29  ;;  %513 = vst.msk [vmem:[#allocation3 + $0x34] sm:$0xf] %vm499_vm3, %v4090_v30  ;;  %v4115_v42 = vpack.c.bf16 %v357_v38, %v357_v38  ;;  %v4117_v43 = vpack.c.bf16 %v358_v39, %v358_v39  ;;  %v359_v44 = vld [vmem:[#allocation2 + $0xf0] sm:$0xff]  ;;  %v360_v45 = vld [vmem:[#allocation2 + $0xf8] sm:$0xff] }
  0x3a   : > { %676 = vrot.lane.b32.xlu0 %v3483_v47, %s3873_s20  ;;  %v361_v46 = vld [vmem:[#allocation2 + $0x108] sm:$0xff]  ;;  %v3492_v47 = vpack.c.bf16 %v4063_v15, %v4063_v15  ;;  %v552_v48 = vld [vmem:[#allocation2 + $0xf1] sm:$0xff]  ;;  %514 = vst.msk [vmem:[#allocation3 + $0x38] sm:$0xf] %vm499_vm3, %v4098_v34  ;;  %515 = vst.msk [vmem:[#allocation3 + $0x3c] sm:$0xf] %vm499_vm3, %v4100_v35  ;;  %v4128_v49 = vpack.c.bf16 %v359_v44, %v359_v44  ;;  %v4130_v50 = vpack.c.bf16 %v360_v45, %v360_v45 }
  0x3b   : > { %516 = vst.msk [vmem:[#allocation3 + $0x40] sm:$0xf] %vm499_vm3, %v4102_v36  ;;  %v551_v53 = vld [vmem:[#allocation2 + $0xe1] sm:$0xff]  ;;  %517 = vst.msk [vmem:[#allocation3 + $0x44] sm:$0xf] %vm499_vm3, %v4113_v41  ;;  %v554_v59 = vld [vmem:[#allocation2 + $0x109] sm:$0xff] }
  0x3c   : > { %678 = vrot.lane.b32.xlu1 %v3484_v52, %s3873_s20  ;;  %v362_v52 = vld [vmem:[#allocation2 + $0x110] sm:$0xff]  ;;  %518 = vst.msk [vmem:[#allocation3 + $0x48] sm:$0xf] %vm499_vm3, %v4115_v42  ;;  %519 = vst.msk [vmem:[#allocation3 + $0x4c] sm:$0xf] %vm499_vm3, %v4117_v43  ;;  %v364_v57 = vld [vmem:[#allocation2 + $0x128] sm:$0xff]  ;;  %v4155_v58 = vpack.c.bf16 %v551_v53, %v551_v53  ;;  %v3497_v0 = vpack.c.bf16 %v554_v59, %v554_v59 }
  0x3d   : > { %v4140_v54 = vpack.c.bf16 %v362_v52, %v362_v52  ;;  %520 = vst.msk [vmem:[#allocation3 + $0x50] sm:$0xf] %vm499_vm3, %v4128_v49  ;;  %521 = vst.msk [vmem:[#allocation3 + $0x54] sm:$0xf] %vm499_vm3, %v4130_v50  ;;  %v553_v62 = vld [vmem:[#allocation2 + $0xf9] sm:$0xff]  ;;  %v556_v4 = vld [vmem:[#allocation2 + $0x121] sm:$0xff] }
  0x3e   : > { %680 = vrot.lane.b32.xlu0 %v3485_v51, %s3873_s20  ;;  %v4132_v51 = vpack.c.bf16 %v361_v46, %v361_v46  ;;  %v366_v2 = vld [vmem:[#allocation2 + $0x140] sm:$0xff]  ;;  %v4169_v3 = vpack.c.bf16 %v553_v62, %v553_v62  ;;  %v555_v8 = vld [vmem:[#allocation2 + $0x111] sm:$0xff]  ;;  %v3499_v9 = vpack.c.bf16 %v556_v4, %v556_v4  ;;  %v557_v20 = vld [vmem:[#allocation2 + $0x129] sm:$0xff] }
  0x3f   : > { %523 = vst.msk [vmem:[#allocation3 + $0x5c] sm:$0xf] %vm499_vm3, %v4140_v54  ;;  %v4173_v7 = vpack.c.bf16 %v366_v2, %v366_v2  ;;  %v367_v12 = vld [vmem:[#allocation2 + $0x150] sm:$0xff]  ;;  %v368_v13 = vld [vmem:[#allocation2 + $0x158] sm:$0xff]  ;;  %v369_v25 = vld [vmem:[#allocation2 + $0x168] sm:$0xff]  ;;  %v3500_v27 = vpack.c.bf16 %v557_v20, %v557_v20 }
  0x40   : > { %682 = vrot.lane.b32.xlu1 %v3486_v56, %s3873_s20  ;;  %522 = vst.msk [vmem:[#allocation3 + $0x58] sm:$0xf] %vm499_vm3, %v4132_v51  ;;  %v363_v56 = vld [vmem:[#allocation2 + $0x120] sm:$0xff]  ;;  %v4182_v18 = vpack.c.bf16 %v367_v12, %v367_v12  ;;  %v4184_v19 = vpack.c.bf16 %v368_v13, %v368_v13  ;;  %v370_v26 = vld [vmem:[#allocation2 + $0x170] sm:$0xff]  ;;  %v4192_v32 = vpack.c.bf16 %v369_v25, %v369_v25 }
  0x41   : > { %v4157_v60 = vpack.c.bf16 %v363_v56, %v363_v56  ;;  %527 = vst.msk [vmem:[#allocation3 + $0x6c] sm:$0xf] %vm499_vm3, %v4173_v7  ;;  %v558_v15 = vld [vmem:[#allocation2 + $0x139] sm:$0xff]  ;;  %v560_v31 = vld [vmem:[#allocation2 + $0x151] sm:$0xff]  ;;  %v4194_v33 = vpack.c.bf16 %v370_v26, %v370_v26  ;;  %v559_v37 = vld [vmem:[#allocation2 + $0x141] sm:$0xff] }
  0x42   : > { %684 = vrot.lane.b32.xlu0 %v3487_v55, %s3873_s20  ;;  %v4150_v55 = vpack.c.bf16 %v552_v48, %v552_v48  ;;  %528 = vst.msk [vmem:[#allocation3 + $0x70] sm:$0xf] %vm499_vm3, %v4182_v18  ;;  %529 = vst.msk [vmem:[#allocation3 + $0x74] sm:$0xf] %vm499_vm3, %v4184_v19  ;;  %v3503_v38 = vpack.c.bf16 %v560_v31, %v560_v31  ;;  %v3502_v39 = vpack.c.bf16 %v559_v37, %v559_v37  ;;  %v562_v44 = vld [vmem:[#allocation2 + $0x169] sm:$0xff]  ;;  %v561_v45 = vld [vmem:[#allocation2 + $0x159] sm:$0xff] }
  0x43   : > { %524 = vst.msk [vmem:[#allocation3 + $0x60] sm:$0xf] %vm499_vm3, %v4157_v60  ;;  %530 = vst.msk [vmem:[#allocation3 + $0x78] sm:$0xf] %vm499_vm3, %v4192_v32  ;;  %v280_v46 = vld [vmem:[%s3975_s19 + $0xf0] sm:$0xff]  ;;  %v3505_v48 = vpack.c.bf16 %v562_v44, %v562_v44  ;;  %v3504_v52 = vpack.c.bf16 %v561_v45, %v561_v45  ;;  %v789_v53 = vld [vmem:[#allocation2 + $0x2] sm:$0xff] }
  0x44   : > { %686 = vrot.lane.b32.xlu1 %v3488_v1, %s3873_s20  ;;  %v365_v1 = vld [vmem:[#allocation2 + $0x138] sm:$0xff]  ;;  %531 = vst.msk [vmem:[#allocation3 + $0x7c] sm:$0xf] %vm499_vm3, %v4194_v33  ;;  %v795_v13 = vld [vmem:[#allocation2 + $0x4a] sm:$0xff]  ;;  %v800_v45 = vld [vmem:[#allocation2 + $0x82] sm:$0xff] }
  0x45   : > { %v4171_v5 = vpack.c.bf16 %v365_v1, %v365_v1  ;;  %314 = vst.msk [vmem:[#allocation2 + $0x181] sm:$0xff] %vm239_vm1, %v280_v46  ;;  %v563_v56 = vld [vmem:[#allocation2 + $0x171] sm:$0xff]  ;;  %v791_v62 = vld [vmem:[#allocation2 + $0x1a] sm:$0xff] }
  0x46   : > { %688 = vrot.lane.b32.xlu0 %v3489_v61, %s3873_s20  ;;  %v4159_v61 = vpack.c.bf16 %v364_v57, %v364_v57  ;;  %v3507_v57 = vpack.c.bf16 %v789_v53, %v789_v53  ;;  %v3506_v59 = vpack.c.bf16 %v563_v56, %v563_v56  ;;  %v4211_v1 = vpack.c.bf16 %v791_v62, %v791_v62  ;;  %v793_v4 = vld [vmem:[#allocation2 + $0x32] sm:$0xff]  ;;  %v799_v31 = vld [vmem:[#allocation2 + $0x7a] sm:$0xff]  ;;  %v798_v37 = vld [vmem:[#allocation2 + $0x6a] sm:$0xff] }
  0x47   : > { %526 = vst.msk [vmem:[#allocation3 + $0x68] sm:$0xf] %vm499_vm3, %v4171_v5  ;;  %v796_v25 = vld [vmem:[#allocation2 + $0x52] sm:$0xff] }
  0x48   : > { %690 = vrot.lane.b32.xlu1 %v3490_v21, %s3873_s20  ;;  %525 = vst.msk [vmem:[#allocation3 + $0x64] sm:$0xf] %vm499_vm3, %v4159_v61  ;;  %v3501_v21 = vpack.c.bf16 %v558_v15, %v558_v15  ;;  %v3513_v15 = vpack.c.bf16 %v795_v13, %v795_v13  ;;  %v801_v44 = vld [vmem:[#allocation2 + $0x92] sm:$0xff] }
  0x49   : > { %v3519_v46 = vpack.c.bf16 %v801_v44, %v801_v44 }
  0x4a   : > { %692 = vrot.lane.b32.xlu0 %v3491_v14, %s3873_s20  ;;  %v3498_v14 = vpack.c.bf16 %v555_v8, %v555_v8  ;;  %v792_v8 = vld [vmem:[#allocation2 + $0x22] sm:$0xff] }
  0x4b   : > { %v4219_v12 = vpack.c.bf16 %v792_v8, %v792_v8 }
  0x4c   : > { %694 = vrot.lane.b32.xlu1 %v3492_v47, %s3873_s20  ;;  %v281_v47 = vld [vmem:[%s3975_s19 + $0xf8] sm:$0xff] }
  0x4d   : > { %315 = vst.msk [vmem:[#allocation2 + $0x189] sm:$0xff] %vm239_vm1, %v281_v47  ;;  %v3518_v47 = vpack.c.bf16 %v800_v45, %v800_v45 }
  0x4e   : > { %696 = vrot.lane.b32.xlu0 %v4105_v40, %s3873_s20 }
  0x50   : > { %698 = vrot.lane.b32.xlu1 %v4155_v58, %s3873_s20 }
  0x52   : > { %700 = vrot.lane.b32.xlu0 %v4150_v55, %s3873_s20 }
  0x54   : > { %702 = vrot.lane.b32.xlu1 %v4169_v3, %s3873_s20 }
  0x56   : > { %704 = vrot.lane.b32.xlu0 %v3497_v0, %s3873_s20  ;;  %v790_v0 = vld [vmem:[#allocation2 + $0xa] sm:$0xff] }
  0x57   : > { %v3508_v2 = vpack.c.bf16 %v790_v0, %v790_v0 }
  0x58   : > { %706 = vrot.lane.b32.xlu1 %v3498_v14, %s3873_s20  ;;  %v794_v14 = vld [vmem:[#allocation2 + $0x3a] sm:$0xff] }
  0x59   : > { %v4225_v20 = vpack.c.bf16 %v794_v14, %v794_v14  ;;  %v809_v14 = vld [vmem:[#allocation2 + $0xf2] sm:$0xff] }
  0x5a   : > { %708 = vrot.lane.b32.xlu0 %v3499_v9, %s3873_s20  ;;  %v4216_v9 = vpack.c.bf16 %v793_v4, %v793_v4  ;;  %v806_v4 = vld [vmem:[#allocation2 + $0xca] sm:$0xff] }
  0x5b   : > { %v3524_v13 = vpack.c.bf16 %v806_v4, %v806_v4  ;;  %v818_v4 = vld [vmem:[#allocation2 + $0x15a] sm:$0xff] }
  0x5c   : > { %710 = vrot.lane.b32.xlu1 %v3500_v27, %s3873_s20  ;;  %v3514_v27 = vpack.c.bf16 %v796_v25, %v796_v25 }
  0x5e   : > { %712 = vrot.lane.b32.xlu0 %v3501_v21, %s3873_s20  ;;  %v797_v21 = vld [vmem:[#allocation2 + $0x62] sm:$0xff] }
  0x5f   : > { %v3515_v26 = vpack.c.bf16 %v797_v21, %v797_v21  ;;  %v4244_v21 = vpack.c.bf16 %v809_v14, %v809_v14 }
  0x60   : > { %714 = vrot.lane.b32.xlu1 %v3502_v39, %s3873_s20  ;;  %v3516_v39 = vpack.c.bf16 %v798_v37, %v798_v37 }
  0x62   : > { %716 = vrot.lane.b32.xlu0 %v3503_v38, %s3873_s20  ;;  %v3517_v38 = vpack.c.bf16 %v799_v31, %v799_v31 }
  0x64   : > { %718 = vrot.lane.b32.xlu1 %v3504_v52, %s3873_s20  ;;  %v802_v52 = vld [vmem:[#allocation2 + $0x9a] sm:$0xff] }
  0x65   : > { %v3520_v56 = vpack.c.bf16 %v802_v52, %v802_v52 }
  0x66   : > { %720 = vrot.lane.b32.xlu0 %v3505_v48, %s3873_s20  ;;  %v803_v48 = vld [vmem:[#allocation2 + $0xaa] sm:$0xff] }
  0x67   : > { %v3521_v53 = vpack.c.bf16 %v803_v48, %v803_v48 }
  0x68   : > { %722 = vrot.lane.b32.xlu1 %v3506_v59, %s3873_s20  ;;  %v804_v59 = vld [vmem:[#allocation2 + $0xb2] sm:$0xff] }
  0x69   : > { %v3522_v0 = vpack.c.bf16 %v804_v59, %v804_v59 }
  0x6a   : > { %917 = vrot.lane.b32.xlu0 %v3507_v57, %s3874_s21  ;;  %v805_v57 = vld [vmem:[#allocation2 + $0xc2] sm:$0xff] }
  0x6b   : > { %v3523_v62 = vpack.c.bf16 %v805_v57, %v805_v57  ;;  %v816_v57 = vld [vmem:[#allocation2 + $0x142] sm:$0xff] }
  0x6c   : > { %919 = vrot.lane.b32.xlu1 %v3508_v2, %s3874_s21  ;;  %v807_v2 = vld [vmem:[#allocation2 + $0xda] sm:$0xff] }
  0x6d   : > { %v4239_v8 = vpack.c.bf16 %v807_v2, %v807_v2 }
  0x6e   : > { %921 = vrot.lane.b32.xlu0 %v4211_v1, %s3874_s21 }
  0x70   : > { %923 = vrot.lane.b32.xlu1 %v4219_v12, %s3874_s21 }
  0x72   : > { %925 = vrot.lane.b32.xlu0 %v4216_v9, %s3874_s21 }
  0x74   : > { %927 = vrot.lane.b32.xlu1 %v4225_v20, %s3874_s21 }
  0x76   : > { %929 = vrot.lane.b32.xlu0 %v3513_v15, %s3874_s21  ;;  %v808_v15 = vld [vmem:[#allocation2 + $0xe2] sm:$0xff] }
  0x77   : > { %v4247_v25 = vpack.c.bf16 %v808_v15, %v808_v15  ;;  %v3536_v15 = vpack.c.bf16 %v818_v4, %v818_v4  ;;  %v1076_v4 = vld [vmem:[#allocation2 + $0x180] sm:$0xff] }
  0x78   : > { %931 = vrot.lane.b32.xlu1 %v3514_v27, %s3874_s21  ;;  %v810_v27 = vld [vmem:[#allocation2 + $0xfa] sm:$0xff] }
  0x79   : > { %v4253_v37 = vpack.c.bf16 %v810_v27, %v810_v27  ;;  %v820_v27 = vld [vmem:[#allocation2 + $0x172] sm:$0xff] }
  0x7a   : > { %933 = vrot.lane.b32.xlu0 %v3515_v26, %s3874_s21  ;;  %v811_v26 = vld [vmem:[#allocation2 + $0x10a] sm:$0xff] }
  0x7b   : > { %v3529_v31 = vpack.c.bf16 %v811_v26, %v811_v26 }
  0x7c   : > { %935 = vrot.lane.b32.xlu1 %v3516_v39, %s3874_s21  ;;  %v812_v39 = vld [vmem:[#allocation2 + $0x112] sm:$0xff] }
  0x7d   : > { %v3530_v45 = vpack.c.bf16 %v812_v39, %v812_v39 }
  0x7e   : > { %937 = vrot.lane.b32.xlu0 %v3517_v38, %s3874_s21  ;;  %v813_v38 = vld [vmem:[#allocation2 + $0x122] sm:$0xff] }
  0x7f   : > { %v3531_v44 = vpack.c.bf16 %v813_v38, %v813_v38  ;;  %v3538_v38 = vpack.c.bf16 %v820_v27, %v820_v27 }
  0x80   : > { %939 = vrot.lane.b32.xlu1 %v3518_v47, %s3874_s21  ;;  %v814_v47 = vld [vmem:[#allocation2 + $0x12a] sm:$0xff] }
  0x81   : > { %v3532_v52 = vpack.c.bf16 %v814_v47, %v814_v47 }
  0x82   : > { %941 = vrot.lane.b32.xlu0 %v3519_v46, %s3874_s21  ;;  %v815_v46 = vld [vmem:[#allocation2 + $0x13a] sm:$0xff] }
  0x83   : > { %v3533_v48 = vpack.c.bf16 %v815_v46, %v815_v46 }
  0x84   : > { %943 = vrot.lane.b32.xlu1 %v3520_v56, %s3874_s21 }
  0x86   : > { %945 = vrot.lane.b32.xlu0 %v3521_v53, %s3874_s21  ;;  %v817_v53 = vld [vmem:[#allocation2 + $0x152] sm:$0xff] }
  0x87   : > { %v3535_v59 = vpack.c.bf16 %v817_v53, %v817_v53 }
  0x88   : > { %947 = vrot.lane.b32.xlu1 %v3522_v0, %s3874_s21  ;;  %v819_v0 = vld [vmem:[#allocation2 + $0x16a] sm:$0xff] }
  0x89   : > { %v3537_v14 = vpack.c.bf16 %v819_v0, %v819_v0 }
  0x8a   : > { %949 = vrot.lane.b32.xlu0 %v3523_v62, %s3874_s21  ;;  %v3534_v62 = vpack.c.bf16 %v816_v57, %v816_v57 }
  0x8c   : > { %951 = vrot.lane.b32.xlu1 %v3524_v13, %s3874_s21 }
  0x8e   : > { %953 = vrot.lane.b32.xlu0 %v4239_v8, %s3874_s21 }
  0x90   : > { %955 = vrot.lane.b32.xlu1 %v4247_v25, %s3874_s21 }
  0x92   : > { %957 = vrot.lane.b32.xlu0 %v4244_v21, %s3874_s21 }
  0x94   : > { %959 = vrot.lane.b32.xlu1 %v4253_v37, %s3874_s21 }
  0x96   : > { %961 = vrot.lane.b32.xlu0 %v3529_v31, %s3874_s21 }
  0x98   : > { %963 = vrot.lane.b32.xlu1 %v3530_v45, %s3874_s21 }
  0x9a   : > { %965 = vrot.lane.b32.xlu0 %v3531_v44, %s3874_s21 }
  0x9c   : > { %v661_v56 = vpop.permute.xlu0 %660  ;;  %967 = vrot.lane.b32.xlu1 %v3532_v52, %s3874_s21 }
  0x9d   : > { %757 = vst.msk [vmem:[#allocation3] sm:$0xf] %vm756_vm4, %v661_v56 }
  0x9e   : > { %969 = vrot.lane.b32.xlu0 %v3533_v48, %s3874_s21  ;;  %v665_v13 = vpop.permute.xlu1 %664 }
  0x9f   : > { %759 = vst.msk [vmem:[#allocation3 + $0x8] sm:$0xf] %vm756_vm4, %v665_v13 }
  0xa0   : > { %v663_v2 = vpop.permute.xlu0 %662  ;;  %971 = vrot.lane.b32.xlu1 %v3534_v62, %s3874_s21 }
  0xa1   : > { %758 = vst.msk [vmem:[#allocation3 + $0x4] sm:$0xf] %vm756_vm4, %v663_v2 }
  0xa2   : > { %973 = vrot.lane.b32.xlu0 %v3535_v59, %s3874_s21  ;;  %v667_v31 = vpop.permute.xlu1 %666 }
  0xa3   : > { %760 = vst.msk [vmem:[#allocation3 + $0xc] sm:$0xf] %vm756_vm4, %v667_v31 }
  0xa4   : > { %v669_v26 = vpop.permute.xlu0 %668  ;;  %975 = vrot.lane.b32.xlu1 %v3536_v15, %s3874_s21  ;;  %v3569_v15 = vpack.c.bf16 %v1076_v4, %v1076_v4 }
  0xa5   : > { %761 = vst.msk [vmem:[#allocation3 + $0x10] sm:$0xf] %vm756_vm4, %v669_v26  ;;  %v1303_v26 = vld [vmem:[#allocation2 + $0x19] sm:$0xff] }
  0xa6   : > { %977 = vrot.lane.b32.xlu0 %v3537_v14, %s3874_s21  ;;  %v671_v44 = vpop.permute.xlu1 %670 }
  0xa7   : > { %762 = vst.msk [vmem:[#allocation3 + $0x14] sm:$0xf] %vm756_vm4, %v671_v44 }
  0xa8   : > { %v673_v39 = vpop.permute.xlu0 %672  ;;  %979 = vrot.lane.b32.xlu1 %v3538_v38, %s3874_s21  ;;  %v3571_v38 = vpack.c.bf16 %v1303_v26, %v1303_v26 }
  0xa9   : > { %763 = vst.msk [vmem:[#allocation3 + $0x18] sm:$0xf] %vm756_vm4, %v673_v39 }
  0xaa   : > { %1174 = vrot.lane.b32.xlu0 %v4049_v63, %s3875_s22  ;;  %v675_v46 = vpop.permute.xlu1 %674 }
  0xab   : > { %764 = vst.msk [vmem:[#allocation3 + $0x1c] sm:$0xf] %vm756_vm4, %v675_v46 }
  0xac   : > { %v677_v45 = vpop.permute.xlu0 %676  ;;  %1176 = vrot.lane.b32.xlu1 %v4055_v6, %s3875_s22 }
  0xad   : > { %765 = vst.msk [vmem:[#allocation3 + $0x20] sm:$0xf] %vm756_vm4, %v677_v45  ;;  %v1304_v45 = vld [vmem:[#allocation2 + $0x21] sm:$0xff] }
  0xae   : > { %1178 = vrot.lane.b32.xlu0 %v4058_v10, %s3875_s22  ;;  %v679_v48 = vpop.permute.xlu1 %678 }
  0xaf   : > { %766 = vst.msk [vmem:[#allocation3 + $0x24] sm:$0xf] %vm756_vm4, %v679_v48  ;;  %v1307_v48 = vld [vmem:[#allocation2 + $0x49] sm:$0xff] }
  0xb0   : > { %v681_v47 = vpop.permute.xlu0 %680  ;;  %1180 = vrot.lane.b32.xlu1 %v4060_v11, %s3875_s22 }
  0xb1   : > { %767 = vst.msk [vmem:[#allocation3 + $0x28] sm:$0xf] %vm756_vm4, %v681_v47  ;;  %v3572_v47 = vpack.c.bf16 %v1304_v45, %v1304_v45  ;;  %v2094_v45 = vld [vmem:[#allocation2 + $0x111] sm:$0xff] }
  0xb2   : > { %1182 = vrot.lane.b32.xlu0 %v4067_v16, %s3875_s22  ;;  %v683_v52 = vpop.permute.xlu1 %682 }
  0xb3   : > { %768 = vst.msk [vmem:[#allocation3 + $0x2c] sm:$0xf] %vm756_vm4, %v683_v52 }
  0xb4   : > { %v685_v63 = vpop.permute.xlu0 %684  ;;  %1184 = vrot.lane.b32.xlu1 %v4069_v17, %s3875_s22 }
  0xb5   : > { %769 = vst.msk [vmem:[#allocation3 + $0x30] sm:$0xf] %vm756_vm4, %v685_v63 }
  0xb6   : > { %1186 = vrot.lane.b32.xlu0 %v4076_v22, %s3875_s22  ;;  %v687_v53 = vpop.permute.xlu1 %686 }
  0xb7   : > { %770 = vst.msk [vmem:[#allocation3 + $0x34] sm:$0xf] %vm756_vm4, %v687_v53 }
  0xb8   : > { %v689_v6 = vpop.permute.xlu0 %688  ;;  %1188 = vrot.lane.b32.xlu1 %v4078_v23, %s3875_s22 }
  0xb9   : > { %771 = vst.msk [vmem:[#allocation3 + $0x38] sm:$0xf] %vm756_vm4, %v689_v6  ;;  %v4375_v6 = vpack.c.bf16 %v1307_v48, %v1307_v48  ;;  %v4495_v48 = vpack.c.bf16 %v2094_v45, %v2094_v45 }
  0xba   : > { %1190 = vrot.lane.b32.xlu0 %v4080_v24, %s3875_s22  ;;  %v691_v57 = vpop.permute.xlu1 %690 }
  0xbb   : > { %772 = vst.msk [vmem:[#allocation3 + $0x3c] sm:$0xf] %vm756_vm4, %v691_v57 }
  0xbc   : > { %v693_v56 = vpop.permute.xlu0 %692  ;;  %1192 = vrot.lane.b32.xlu1 %v4086_v28, %s3875_s22 }
  0xbd   : > { %773 = vst.msk [vmem:[#allocation3 + $0x40] sm:$0xf] %vm756_vm4, %v693_v56  ;;  %v1309_v56 = vld [vmem:[#allocation2 + $0x61] sm:$0xff] }
  0xbe   : > { %1194 = vrot.lane.b32.xlu0 %v4088_v29, %s3875_s22  ;;  %v695_v59 = vpop.permute.xlu1 %694 }
  0xbf   : > { %774 = vst.msk [vmem:[#allocation3 + $0x44] sm:$0xf] %vm756_vm4, %v695_v59 }
  0xc0   : > { %v697_v22 = vpop.permute.xlu0 %696  ;;  %1196 = vrot.lane.b32.xlu1 %v4090_v30, %s3875_s22 }
  0xc1   : > { %775 = vst.msk [vmem:[#allocation3 + $0x48] sm:$0xf] %vm756_vm4, %v697_v22  ;;  %v1308_v22 = vld [vmem:[#allocation2 + $0x51] sm:$0xff] }
  0xc2   : > { %1198 = vrot.lane.b32.xlu0 %v4098_v34, %s3875_s22  ;;  %v699_v24 = vpop.permute.xlu1 %698 }
  0xc3   : > { %776 = vst.msk [vmem:[#allocation3 + $0x4c] sm:$0xf] %vm756_vm4, %v699_v24  ;;  %v4388_v24 = vpack.c.bf16 %v1308_v22, %v1308_v22 }
  0xc4   : > { %v701_v23 = vpop.permute.xlu0 %700  ;;  %1200 = vrot.lane.b32.xlu1 %v4100_v35, %s3875_s22 }
  0xc5   : > { %777 = vst.msk [vmem:[#allocation3 + $0x50] sm:$0xf] %vm756_vm4, %v701_v23  ;;  %v4384_v23 = vpack.c.bf16 %v1309_v56, %v1309_v56  ;;  %v3830_v56 = vld [vmem:[%s5040_s1 + $0x8] sm:$0xff]  }
  0xc6   : > { %1202 = vrot.lane.b32.xlu0 %v4102_v36, %s3875_s22  ;;  %v703_v29 = vpop.permute.xlu1 %702 }
  0xc7   : > { %778 = vst.msk [vmem:[#allocation3 + $0x54] sm:$0xf] %vm756_vm4, %v703_v29 }
  0xc8   : > { %v705_v28 = vpop.permute.xlu0 %704  ;;  %1204 = vrot.lane.b32.xlu1 %v4113_v41, %s3875_s22 }
  0xc9   : > { %779 = vst.msk [vmem:[#allocation3 + $0x58] sm:$0xf] %vm756_vm4, %v705_v28  ;;  %v1311_v28 = vld [vmem:[#allocation2 + $0x79] sm:$0xff] }
  0xca   : > { %1206 = vrot.lane.b32.xlu0 %v4115_v42, %s3875_s22  ;;  %v707_v34 = vpop.permute.xlu1 %706 }
  0xcb   : > { %780 = vst.msk [vmem:[#allocation3 + $0x5c] sm:$0xf] %vm756_vm4, %v707_v34 }
  0xcc   : > { %v709_v30 = vpop.permute.xlu0 %708  ;;  %1208 = vrot.lane.b32.xlu1 %v4117_v43, %s3875_s22 }
  0xcd   : > { %781 = vst.msk [vmem:[#allocation3 + $0x60] sm:$0xf] %vm756_vm4, %v709_v30  ;;  %v1310_v30 = vld [vmem:[#allocation2 + $0x69] sm:$0xff] }
  0xce   : > { %1210 = vrot.lane.b32.xlu0 %v4128_v49, %s3875_s22  ;;  %v711_v36 = vpop.permute.xlu1 %710 }
  0xcf   : > { %782 = vst.msk [vmem:[#allocation3 + $0x64] sm:$0xf] %vm756_vm4, %v711_v36  ;;  %v4398_v36 = vpack.c.bf16 %v1310_v30, %v1310_v30  ;;  %v3832_v30 = vld [vmem:[%s5040_s1] sm:$0xff]  }
  0xd0   : > { %v713_v35 = vpop.permute.xlu0 %712  ;;  %1212 = vrot.lane.b32.xlu1 %v4130_v50, %s3875_s22 }
  0xd1   : > { %783 = vst.msk [vmem:[#allocation3 + $0x68] sm:$0xf] %vm756_vm4, %v713_v35  ;;  %v4394_v35 = vpack.c.bf16 %v1311_v28, %v1311_v28  ;;  %v2349_v28 = vld [vmem:[#allocation2 + $0xfa] sm:$0xff] }
  0xd2   : > { %1214 = vrot.lane.b32.xlu0 %v4132_v51, %s3875_s22  ;;  %v715_v42 = vpop.permute.xlu1 %714 }
  0xd3   : > { %784 = vst.msk [vmem:[#allocation3 + $0x6c] sm:$0xf] %vm756_vm4, %v715_v42  ;;  %v1312_v42 = vld [vmem:[#allocation2 + $0x81] sm:$0xff] }
  0xd4   : > { %v717_v41 = vpop.permute.xlu0 %716  ;;  %1216 = vrot.lane.b32.xlu1 %v4140_v54, %s3875_s22 }
  0xd5   : > { %785 = vst.msk [vmem:[#allocation3 + $0x70] sm:$0xf] %vm756_vm4, %v717_v41 }
  0xd6   : > { %1218 = vrot.lane.b32.xlu0 %v4157_v60, %s3875_s22  ;;  %v719_v62 = vpop.permute.xlu1 %718 }
  0xd7   : > { %786 = vst.msk [vmem:[#allocation3 + $0x74] sm:$0xf] %vm756_vm4, %v719_v62  ;;  %v4406_v62 = vpack.c.bf16 %v1312_v42, %v1312_v42  ;;  %v2350_v42 = vld [vmem:[#allocation2 + $0x10a] sm:$0xff] }
  0xd8   : > { %v721_v43 = vpop.permute.xlu0 %720  ;;  %1220 = vrot.lane.b32.xlu1 %v4159_v61, %s3875_s22 }
  0xd9   : > { %787 = vst.msk [vmem:[#allocation3 + $0x78] sm:$0xf] %vm756_vm4, %v721_v43 }
  0xda   : > { %1222 = vrot.lane.b32.xlu0 %v4171_v5, %s3875_s22  ;;  %v723_v2 = vpop.permute.xlu1 %722 }
  0xdb   : > { %788 = vst.msk [vmem:[#allocation3 + $0x7c] sm:$0xf] %vm756_vm4, %v723_v2 }
  0xdc   : > { %v918_v0 = vpop.permute.xlu0 %917  ;;  %1224 = vrot.lane.b32.xlu1 %v4173_v7, %s3875_s22 }
  0xdd   : > { %1014 = vst.msk [vmem:[#allocation3] sm:$0xf] %vm1013_vm5, %v918_v0 }
  0xde   : > { %1226 = vrot.lane.b32.xlu0 %v4182_v18, %s3875_s22  ;;  %v920_v14 = vpop.permute.xlu1 %919  ;;  %v1077_v18 = vld [vmem:[#allocation2 + $0x188] sm:$0xff] }
  0xdf   : > { %1015 = vst.msk [vmem:[#allocation3 + $0x4] sm:$0xf] %vm1013_vm5, %v920_v14  ;;  %v3570_v39 = vpack.c.bf16 %v1077_v18, %v1077_v18 }
  0xe0   : > { %v922_v13 = vpop.permute.xlu0 %921  ;;  %1228 = vrot.lane.b32.xlu1 %v4184_v19, %s3875_s22 }
  0xe1   : > { %1016 = vst.msk [vmem:[#allocation3 + $0x8] sm:$0xf] %vm1013_vm5, %v922_v13 }
  0xe2   : > { %1230 = vrot.lane.b32.xlu0 %v4192_v32, %s3875_s22  ;;  %v924_v31 = vpop.permute.xlu1 %923  ;;  %v1305_v32 = vld [vmem:[#allocation2 + $0x31] sm:$0xff] }
  0xe3   : > { %1017 = vst.msk [vmem:[#allocation3 + $0xc] sm:$0xf] %vm1013_vm5, %v924_v31  ;;  %v4368_v19 = vpack.c.bf16 %v1305_v32, %v1305_v32  ;;  %v2093_v31 = vld [vmem:[#allocation2 + $0x109] sm:$0xff]  ;;  %v2332_v32 = vld [vmem:[#allocation2 + $0x32] sm:$0xff] }
  0xe4   : > { %v926_v27 = vpop.permute.xlu0 %925  ;;  %1232 = vrot.lane.b32.xlu1 %v4194_v33, %s3875_s22  ;;  %v1306_v33 = vld [vmem:[#allocation2 + $0x39] sm:$0xff] }
  0xe5   : > { %1018 = vst.msk [vmem:[#allocation3 + $0x10] sm:$0xf] %vm1013_vm5, %v926_v27  ;;  %v4378_v53 = vpack.c.bf16 %v1306_v33, %v1306_v33 }
  0xe6   : > { %1234 = vrot.lane.b32.xlu0 %v3569_v15, %s3875_s22  ;;  %v928_v46 = vpop.permute.xlu1 %927 }
  0xe7   : > { %1019 = vst.msk [vmem:[#allocation3 + $0x14] sm:$0xf] %vm1013_vm5, %v928_v46 }
  0xe8   : > { %v930_v44 = vpop.permute.xlu0 %929  ;;  %1236 = vrot.lane.b32.xlu1 %v3570_v39, %s3875_s22 }
  0xe9   : > { %1020 = vst.msk [vmem:[#allocation3 + $0x18] sm:$0xf] %vm1013_vm5, %v930_v44 }
  0xea   : > { %1431 = vrot.lane.b32.xlu0 %v3571_v38, %s3876_s23  ;;  %v932_v52 = vpop.permute.xlu1 %931 }
  0xeb   : > { %1021 = vst.msk [vmem:[#allocation3 + $0x1c] sm:$0xf] %vm1013_vm5, %v932_v52 }
  0xec   : > { %v934_v63 = vpop.permute.xlu0 %933  ;;  %1433 = vrot.lane.b32.xlu1 %v3572_v47, %s3876_s23  ;;  %v3699_v47 = vpack.c.bf16 %v2332_v32, %v2332_v32 }
  0xed   : > { %1022 = vst.msk [vmem:[#allocation3 + $0x20] sm:$0xf] %vm1013_vm5, %v934_v63  ;;  %v2348_v63 = vld [vmem:[#allocation2 + $0xf2] sm:$0xff] }
  0xee   : > { %1435 = vrot.lane.b32.xlu0 %v4368_v19, %s3876_s23  ;;  %v936_v59 = vpop.permute.xlu1 %935 }
  0xef   : > { %1023 = vst.msk [vmem:[#allocation3 + $0x24] sm:$0xf] %vm1013_vm5, %v936_v59  ;;  %v2334_v59 = vld [vmem:[#allocation2 + $0x4a] sm:$0xff] }
  0xf0   : > { %v938_v57 = vpop.permute.xlu0 %937  ;;  %1437 = vrot.lane.b32.xlu1 %v4378_v53, %s3876_s23 }
  0xf1   : > { %1024 = vst.msk [vmem:[#allocation3 + $0x28] sm:$0xf] %vm1013_vm5, %v938_v57  ;;  %v3715_v57 = vpack.c.bf16 %v2348_v63, %v2348_v63 }
  0xf2   : > { %1439 = vrot.lane.b32.xlu0 %v4375_v6, %s3876_s23  ;;  %v940_v34 = vpop.permute.xlu1 %939 }
  0xf3   : > { %1025 = vst.msk [vmem:[#allocation3 + $0x2c] sm:$0xf] %vm1013_vm5, %v940_v34  ;;  %v3701_v34 = vpack.c.bf16 %v2334_v59, %v2334_v59 }
  0xf4   : > { %v942_v29 = vpop.permute.xlu0 %941  ;;  %1441 = vrot.lane.b32.xlu1 %v4388_v24, %s3876_s23 }
  0xf5   : > { %1026 = vst.msk [vmem:[#allocation3 + $0x30] sm:$0xf] %vm1013_vm5, %v942_v29 }
  0xf6   : > { %1443 = vrot.lane.b32.xlu0 %v4384_v23, %s3876_s23  ;;  %v944_v43 = vpop.permute.xlu1 %943 }
  0xf7   : > { %1027 = vst.msk [vmem:[#allocation3 + $0x34] sm:$0xf] %vm1013_vm5, %v944_v43 }
  0xf8   : > { %v946_v41 = vpop.permute.xlu0 %945  ;;  %1445 = vrot.lane.b32.xlu1 %v4398_v36, %s3876_s23 }
  0xf9   : > { %1028 = vst.msk [vmem:[#allocation3 + $0x38] sm:$0xf] %vm1013_vm5, %v946_v41  ;;  %v3716_v41 = vpack.c.bf16 %v2349_v28, %v2349_v28 }
  0xfa   : > { %1447 = vrot.lane.b32.xlu0 %v4394_v35, %s3876_s23  ;;  %v948_v2 = vpop.permute.xlu1 %947 }
  0xfb   : > { %1029 = vst.msk [vmem:[#allocation3 + $0x3c] sm:$0xf] %vm1013_vm5, %v948_v2 }
  0xfc   : > { %v950_v0 = vpop.permute.xlu0 %949  ;;  %1449 = vrot.lane.b32.xlu1 %v4406_v62, %s3876_s23 }
  0xfd   : > { %1030 = vst.msk [vmem:[#allocation3 + $0x40] sm:$0xf] %vm1013_vm5, %v950_v0  ;;  %v2335_v0 = vld [vmem:[#allocation2 + $0x52] sm:$0xff] }
  0xfe   : > { %1463 = vrot.lane.b32.xlu0 %v4105_v40, %s3876_s23  ;;  %v952_v13 = vpop.permute.xlu1 %951 }
  0xff   : > { %1031 = vst.msk [vmem:[#allocation3 + $0x44] sm:$0xf] %vm1013_vm5, %v952_v13  ;;  %v3702_v13 = vpack.c.bf16 %v2335_v0, %v2335_v0 }
 0x100   : > { %v954_v4 = vpop.permute.xlu0 %953  ;;  %1465 = vrot.lane.b32.xlu1 %v4155_v58, %s3876_s23 }
 0x101   : > { %1032 = vst.msk [vmem:[#allocation3 + $0x48] sm:$0xf] %vm1013_vm5, %v954_v4  ;;  %v3717_v4 = vpack.c.bf16 %v2350_v42, %v2350_v42 }
 0x102   : > { %1467 = vrot.lane.b32.xlu0 %v4150_v55, %s3876_s23  ;;  %v956_v15 = vpop.permute.xlu1 %955 }
 0x103   : > { %1033 = vst.msk [vmem:[#allocation3 + $0x4c] sm:$0xf] %vm1013_vm5, %v956_v15  ;;  %v2351_v15 = vld [vmem:[#allocation2 + $0x112] sm:$0xff] }
 0x104   : > { %v958_v14 = vpop.permute.xlu0 %957  ;;  %1469 = vrot.lane.b32.xlu1 %v4169_v3, %s3876_s23 }
 0x105   : > { %1034 = vst.msk [vmem:[#allocation3 + $0x50] sm:$0xf] %vm1013_vm5, %v958_v14 }
 0x106   : > { %1688 = vrot.lane.b32.xlu0 %v4211_v1, %s3877_s24  ;;  %v960_v26 = vpop.permute.xlu1 %959 }
 0x107   : > { %1035 = vst.msk [vmem:[#allocation3 + $0x54] sm:$0xf] %vm1013_vm5, %v960_v26  ;;  %v3718_v26 = vpack.c.bf16 %v2351_v15, %v2351_v15 }
 0x108   : > { %v962_v40 = vpop.permute.xlu0 %961  ;;  %1690 = vrot.lane.b32.xlu1 %v4219_v12, %s3877_s24 }
 0x109   : > { %1036 = vst.msk [vmem:[#allocation3 + $0x58] sm:$0xf] %vm1013_vm5, %v962_v40 }
 0x10a   : > { %1720 = vrot.lane.b32.xlu0 %v4239_v8, %s3877_s24  ;;  %v964_v58 = vpop.permute.xlu1 %963 }
 0x10b   : > { %1037 = vst.msk [vmem:[#allocation3 + $0x5c] sm:$0xf] %vm1013_vm5, %v964_v58 }
 0x10c   : > { %v966_v55 = vpop.permute.xlu0 %965  ;;  %1722 = vrot.lane.b32.xlu1 %v4247_v25, %s3877_s24 }
 0x10d   : > { %1038 = vst.msk [vmem:[#allocation3 + $0x60] sm:$0xf] %vm1013_vm5, %v966_v55  ;;  %v1325_v55 = vld [vmem:[#allocation2 + $0x121] sm:$0xff] }
 0x10e   : > { %1692 = vrot.lane.b32.xlu0 %v4216_v9, %s3877_s24  ;;  %v968_v1 = vpop.permute.xlu1 %967 }
 0x10f   : > { %1039 = vst.msk [vmem:[#allocation3 + $0x64] sm:$0xf] %vm1013_vm5, %v968_v1  ;;  %v4524_v1 = vpack.c.bf16 %v1325_v55, %v1325_v55 }
 0x110   : > { %v970_v3 = vpop.permute.xlu0 %969  ;;  %1694 = vrot.lane.b32.xlu1 %v4225_v20, %s3877_s24 }
 0x111   : > { %1040 = vst.msk [vmem:[#allocation3 + $0x68] sm:$0xf] %vm1013_vm5, %v970_v3 }
 0x112   : > { %1724 = vrot.lane.b32.xlu0 %v4244_v21, %s3877_s24  ;;  %v972_v8 = vpop.permute.xlu1 %971 }
 0x113   : > { %1041 = vst.msk [vmem:[#allocation3 + $0x6c] sm:$0xf] %vm1013_vm5, %v972_v8  ;;  %v1326_v8 = vld [vmem:[#allocation2 + $0x129] sm:$0xff] }
 0x114   : > { %v974_v12 = vpop.permute.xlu0 %973  ;;  %1726 = vrot.lane.b32.xlu1 %v4253_v37, %s3877_s24 }
 0x115   : > { %1042 = vst.msk [vmem:[#allocation3 + $0x70] sm:$0xf] %vm1013_vm5, %v974_v12 }
 0x116   : > { %1946 = vrot.lane.b32.xlu0 %v4058_v10, %s3878_s25  ;;  %v976_v25 = vpop.permute.xlu1 %975 }
 0x117   : > { %1043 = vst.msk [vmem:[#allocation3 + $0x74] sm:$0xf] %vm1013_vm5, %v976_v25  ;;  %v4533_v25 = vpack.c.bf16 %v1326_v8, %v1326_v8 }
 0x118   : > { %v978_v9 = vpop.permute.xlu0 %977  ;;  %1948 = vrot.lane.b32.xlu1 %v4060_v11, %s3878_s25  ;;  %v2091_v11 = vld [vmem:[#allocation2 + $0xf1] sm:$0xff] }
 0x119   : > { %1044 = vst.msk [vmem:[#allocation3 + $0x78] sm:$0xf] %vm1013_vm5, %v978_v9 }
 0x11a   : > { %1978 = vrot.lane.b32.xlu0 %v4128_v49, %s3878_s25  ;;  %v980_v21 = vpop.permute.xlu1 %979 }
 0x11b   : > { %1045 = vst.msk [vmem:[#allocation3 + $0x7c] sm:$0xf] %vm1013_vm5, %v980_v21 }
 0x11c   : > { %v1175_v20 = vpop.permute.xlu0 %1174  ;;  %1980 = vrot.lane.b32.xlu1 %v4130_v50, %s3878_s25 }
 0x11d   : > { %1271 = vst.msk [vmem:[#allocation3] sm:$0xf] %vm1270_vm6, %v1175_v20 }
 0x11e   : > { %1950 = vrot.lane.b32.xlu0 %v4067_v16, %s3878_s25  ;;  %v1177_v37 = vpop.permute.xlu1 %1176  ;;  %v3683_v16 = vpack.c.bf16 %v2091_v11, %v2091_v11 }
 0x11f   : > { %1272 = vst.msk [vmem:[#allocation3 + $0x4] sm:$0xf] %vm1270_vm6, %v1177_v37 }
 0x120   : > { %v1179_v10 = vpop.permute.xlu0 %1178  ;;  %1952 = vrot.lane.b32.xlu1 %v4069_v17, %s3878_s25 }
 0x121   : > { %1273 = vst.msk [vmem:[#allocation3 + $0x8] sm:$0xf] %vm1270_vm6, %v1179_v10  ;;  %v1566_v10 = vld [vmem:[#allocation2 + $0x62] sm:$0xff] }
 0x122   : > { %1982 = vrot.lane.b32.xlu0 %v4132_v51, %s3878_s25  ;;  %v1181_v27 = vpop.permute.xlu1 %1180  ;;  %v2092_v51 = vld [vmem:[#allocation2 + $0xf9] sm:$0xff] }
 0x123   : > { %1274 = vst.msk [vmem:[#allocation3 + $0xc] sm:$0xf] %vm1270_vm6, %v1181_v27  ;;  %v3684_v17 = vpack.c.bf16 %v2092_v51, %v2092_v51  ;;  %v1582_v27 = vld [vmem:[#allocation2 + $0x122] sm:$0xff] }
 0x124   : > { %v1183_v49 = vpop.permute.xlu0 %1182  ;;  %1984 = vrot.lane.b32.xlu1 %v4140_v54, %s3878_s25  ;;  %v4483_v54 = vpack.c.bf16 %v2093_v31, %v2093_v31  ;;  %v1822_v31 = vld [vmem:[#allocation2 + $0x60] sm:$0xff] }
 0x125   : > { %1275 = vst.msk [vmem:[#allocation3 + $0x10] sm:$0xf] %vm1270_vm6, %v1183_v49  ;;  %v4543_v49 = vpack.c.bf16 %v1566_v10, %v1566_v10  ;;  %v3639_v32 = vpack.c.bf16 %v1822_v31, %v1822_v31  ;;  %v1314_v10 = vld [vmem:[#allocation2 + $0x99] sm:$0xff] }
 0x126   : > { %2203 = vrot.lane.b32.xlu0 %v4368_v19, %s3879_s26  ;;  %v1185_v18 = vpop.permute.xlu1 %1184  ;;  %v3829_v19 = vld [vmem:[%s5040_s1 + $0x10] ss:$0 sps:$4 sm:$0x33]   ;;  %v1570_v31 = vld [vmem:[#allocation2 + $0x92] sm:$0xff] }
 0x127   : > { %1276 = vst.msk [vmem:[#allocation3 + $0x14] sm:$0xf] %vm1270_vm6, %v1185_v18  ;;  %3794 = vmatprep.subr.msk.bf16.mxu0 %vm2777_vm7, %v3829_v19  ;;  %v2779_v33 = vsel %vm2777_vm7, %v3829_v19, 0  ;;  %3795 = vmatprep.subr.msk.bf16.mxu1 %vm2777_vm7, %v3829_v19  ;;  %v4550_v18 = vpack.c.bf16 %v1582_v27, %v1582_v27 }
 0x128   : > { %v1187_v50 = vpop.permute.xlu0 %1186  ;;  %2205 = vrot.lane.b32.xlu1 %v4378_v53, %s3879_s26  ;;  %3751 = vmatpush3.bf16.msra.mxu0 %v2779_v33 }
 0x129   : > { %1277 = vst.msk [vmem:[#allocation3 + $0x18] sm:$0xf] %vm1270_vm6, %v1187_v50  ;;  %3791 = vmatpush3.bf16.msra.mxu1 %v2779_v33  ;;  %3752 = vmatprep.subr.bf16.mxu0 %v3830_v56  ;;  %v1567_v50 = vld [vmem:[#allocation2 + $0x6a] sm:$0xff] }
 0x12a   : > { %2235 = vrot.lane.b32.xlu0 %v3683_v16, %s3879_s26  ;;  %v1189_v39 = vpop.permute.xlu1 %1188  ;;  %3789 = vmatprep.subr.bf16.mxu1 %v3830_v56 }
 0x12b   : > { %1278 = vst.msk [vmem:[#allocation3 + $0x1c] sm:$0xf] %vm1270_vm6, %v1189_v39  ;;  %v1583_v39 = vld [vmem:[#allocation2 + $0x12a] sm:$0xff] }
 0x12c   : > { %v1191_v38 = vpop.permute.xlu0 %1190  ;;  %2237 = vrot.lane.b32.xlu1 %v3684_v17, %s3879_s26  ;;  %3753 = vmatpush3.bf16.msra.mxu0 %v3830_v56  ;;  %v4553_v17 = vpack.c.bf16 %v1567_v50, %v1567_v50 }
 0x12d   : > { %1279 = vst.msk [vmem:[#allocation3 + $0x20] sm:$0xf] %vm1270_vm6, %v1191_v38  ;;  %3792 = vmatpush3.bf16.msra.mxu1 %v3830_v56  ;;  %3754 = vmatprep.subr.bf16.mxu0 %v3832_v30 }
 0x12e   : > { %2207 = vrot.lane.b32.xlu0 %v4375_v6, %s3879_s26  ;;  %v1193_v46 = vpop.permute.xlu1 %1192  ;;  %v2333_v6 = vld [vmem:[#allocation2 + $0x3a] sm:$0xff]  ;;  %3790 = vmatprep.subr.bf16.mxu1 %v3832_v30 }
 0x12f   : > { %1280 = vst.msk [vmem:[#allocation3 + $0x24] sm:$0xf] %vm1270_vm6, %v1193_v46  ;;  %v3700_v22 = vpack.c.bf16 %v2333_v6, %v2333_v6  ;;  %v1823_v46 = vld [vmem:[#allocation2 + $0x68] sm:$0xff] }
 0x130   : > { %v1195_v44 = vpop.permute.xlu0 %1194  ;;  %2209 = vrot.lane.b32.xlu1 %v4388_v24, %s3879_s26  ;;  %3755 = vmatpush3.bf16.msra.mxu0 %v3832_v30 }
 0x131   : > { %1281 = vst.msk [vmem:[#allocation3 + $0x28] sm:$0xf] %vm1270_vm6, %v1195_v44  ;;  %3793 = vmatpush3.bf16.msra.mxu1 %v3832_v30  ;;  %v4561_v44 = vpack.c.bf16 %v1583_v39, %v1583_v39 }
 0x132   : > { %2239 = vrot.lane.b32.xlu0 %v4483_v54, %s3879_s26  ;;  %v1197_v53 = vpop.permute.xlu1 %1196 }
 0x133   : > { %1282 = vst.msk [vmem:[#allocation3 + $0x2c] sm:$0xf] %vm1270_vm6, %v1197_v53  ;;  %v1825_v53 = vld [vmem:[#allocation2 + $0x80] sm:$0xff] }
 0x134   : > { %v1199_v52 = vpop.permute.xlu0 %1198  ;;  %2241 = vrot.lane.b32.xlu1 %v4495_v48, %s3879_s26 }
 0x135   : > { %1283 = vst.msk [vmem:[#allocation3 + $0x30] sm:$0xf] %vm1270_vm6, %v1199_v52 }
 0x136   : > { %2460 = vrot.lane.b32.xlu0 %v3699_v47, %s3880_s4  ;;  %v1201_v29 = vpop.permute.xlu1 %1200  ;;  %v3640_v47 = vpack.c.bf16 %v1823_v46, %v1823_v46 }
 0x137   : > { %1284 = vst.msk [vmem:[#allocation3 + $0x34] sm:$0xf] %vm1270_vm6, %v1201_v29 }
 0x138   : > { %v1203_v24 = vpop.permute.xlu0 %1202  ;;  %2462 = vrot.lane.b32.xlu1 %v3700_v22, %s3880_s4 }
 0x139   : > { %1285 = vst.msk [vmem:[#allocation3 + $0x38] sm:$0xf] %vm1270_vm6, %v1203_v24 }
 0x13a   : > { %2492 = vrot.lane.b32.xlu0 %v3715_v57, %s3880_s4  ;;  %v1205_v2 = vpop.permute.xlu1 %1204  ;;  %v3642_v57 = vpack.c.bf16 %v1825_v53, %v1825_v53 }
 0x13b   : > { %1286 = vst.msk [vmem:[#allocation3 + $0x3c] sm:$0xf] %vm1270_vm6, %v1205_v2 }
 0x13c   : > { %v1207_v43 = vpop.permute.xlu0 %1206  ;;  %2494 = vrot.lane.b32.xlu1 %v3716_v41, %s3880_s4 }
 0x13d   : > { %1287 = vst.msk [vmem:[#allocation3 + $0x40] sm:$0xf] %vm1270_vm6, %v1207_v43  ;;  %v2338_v43 = vld [vmem:[#allocation2 + $0x7a] sm:$0xff] }
 0x13e   : > { %2464 = vrot.lane.b32.xlu0 %v3701_v34, %s3880_s4  ;;  %v1209_v40 = vpop.permute.xlu1 %1208 }
 0x13f   : > { %1288 = vst.msk [vmem:[#allocation3 + $0x44] sm:$0xf] %vm1270_vm6, %v1209_v40 }
 0x140   : > { %v1211_v14 = vpop.permute.xlu0 %1210  ;;  %2466 = vrot.lane.b32.xlu1 %v3702_v13, %s3880_s4 }
 0x141   : > { %1289 = vst.msk [vmem:[#allocation3 + $0x48] sm:$0xf] %vm1270_vm6, %v1211_v14  ;;  %v2339_v14 = vld [vmem:[#allocation2 + $0x82] sm:$0xff] }
 0x142   : > { %2496 = vrot.lane.b32.xlu0 %v3717_v4, %s3880_s4  ;;  %v1213_v3 = vpop.permute.xlu1 %1212 }
 0x143   : > { %1290 = vst.msk [vmem:[#allocation3 + $0x4c] sm:$0xf] %vm1270_vm6, %v1213_v3 }
 0x144   : > { %v1215_v58 = vpop.permute.xlu0 %1214  ;;  %2498 = vrot.lane.b32.xlu1 %v3718_v26, %s3880_s4 }
 0x145   : > { %1291 = vst.msk [vmem:[#allocation3 + $0x50] sm:$0xf] %vm1270_vm6, %v1215_v58  ;;  %v2355_v58 = vld [vmem:[#allocation2 + $0x142] sm:$0xff] }
 0x146   : > { %1471 = vrot.lane.b32.xlu0 %v4483_v54, %s3876_s23  ;;  %v1217_v9 = vpop.permute.xlu1 %1216 }
 0x147   : > { %1292 = vst.msk [vmem:[#allocation3 + $0x54] sm:$0xf] %vm1270_vm6, %v1217_v9 }
 0x148   : > { %v1219_v12 = vpop.permute.xlu0 %1218  ;;  %1473 = vrot.lane.b32.xlu1 %v4495_v48, %s3876_s23  ;;  %v1824_v48 = vld [vmem:[#allocation2 + $0x78] sm:$0xff] }
 0x149   : > { %1293 = vst.msk [vmem:[#allocation3 + $0x58] sm:$0xf] %vm1270_vm6, %v1219_v12  ;;  %v3641_v52 = vpack.c.bf16 %v1824_v48, %v1824_v48  ;;  %v1313_v12 = vld [vmem:[#allocation2 + $0x91] sm:$0xff] }
 0x14a   : > { %1475 = vrot.lane.b32.xlu0 %v4524_v1, %s3876_s23  ;;  %v1221_v21 = vpop.permute.xlu1 %1220  ;;  %v1826_v48 = vld [vmem:[#allocation2 + $0x90] sm:$0xff] }
 0x14b   : > { %1294 = vst.msk [vmem:[#allocation3 + $0x5c] sm:$0xf] %vm1270_vm6, %v1221_v21 }
 0x14c   : > { %v1223_v20 = vpop.permute.xlu0 %1222  ;;  %1477 = vrot.lane.b32.xlu1 %v4533_v25, %s3876_s23 }
 0x14d   : > { %1295 = vst.msk [vmem:[#allocation3 + $0x60] sm:$0xf] %vm1270_vm6, %v1223_v20  ;;  %v1329_v20 = vld [vmem:[#allocation2 + $0x151] sm:$0xff] }
 0x14e   : > { %1696 = vrot.lane.b32.xlu0 %v3701_v34, %s3877_s24  ;;  %v1225_v11 = vpop.permute.xlu1 %1224  ;;  %v2098_v34 = vld [vmem:[#allocation2 + $0x141] sm:$0xff] }
 0x14f   : > { %1296 = vst.msk [vmem:[#allocation3 + $0x64] sm:$0xf] %vm1270_vm6, %v1225_v11  ;;  %v4636_v11 = vpack.c.bf16 %v1329_v20, %v1329_v20 }
 0x150   : > { %v1227_v37 = vpop.permute.xlu0 %1226  ;;  %1698 = vrot.lane.b32.xlu1 %v3702_v13, %s3877_s24 }
 0x151   : > { %1297 = vst.msk [vmem:[#allocation3 + $0x68] sm:$0xf] %vm1270_vm6, %v1227_v37 }
 0x152   : > { %1728 = vrot.lane.b32.xlu0 %v3717_v4, %s3877_s24  ;;  %v1229_v51 = vpop.permute.xlu1 %1228  ;;  %v2354_v4 = vld [vmem:[#allocation2 + $0x13a] sm:$0xff] }
 0x153   : > { %1298 = vst.msk [vmem:[#allocation3 + $0x6c] sm:$0xf] %vm1270_vm6, %v1229_v51  ;;  %v3721_v40 = vpack.c.bf16 %v2354_v4, %v2354_v4 }
 0x154   : > { %v1231_v16 = vpop.permute.xlu0 %1230  ;;  %1730 = vrot.lane.b32.xlu1 %v3718_v26, %s3877_s24  ;;  %v3706_v26 = vpack.c.bf16 %v2339_v14, %v2339_v14 }
 0x155   : > { %1299 = vst.msk [vmem:[#allocation3 + $0x70] sm:$0xf] %vm1270_vm6, %v1231_v16  ;;  %v1330_v16 = vld [vmem:[#allocation2 + $0x159] sm:$0xff] }
 0x156   : > { %1700 = vrot.lane.b32.xlu0 %v4543_v49, %s3877_s24  ;;  %v1233_v54 = vpop.permute.xlu1 %1232  ;;  %v4647_v51 = vpack.c.bf16 %v1330_v16, %v1330_v16 }
 0x157   : > { %1300 = vst.msk [vmem:[#allocation3 + $0x74] sm:$0xf] %vm1270_vm6, %v1233_v54  ;;  %v4657_v54 = vpack.c.bf16 %v1570_v31, %v1570_v31  ;;  %v2358_v31 = vld [vmem:[#allocation2 + $0x16a] sm:$0xff] }
 0x158   : > { %v1235_v38 = vpop.permute.xlu0 %1234  ;;  %1702 = vrot.lane.b32.xlu1 %v4553_v17, %s3877_s24 }
 0x159   : > { %1301 = vst.msk [vmem:[#allocation3 + $0x78] sm:$0xf] %vm1270_vm6, %v1235_v38 }
 0x15a   : > { %1732 = vrot.lane.b32.xlu0 %v4550_v18, %s3877_s24  ;;  %v1237_v19 = vpop.permute.xlu1 %1236 }
 0x15b   : > { %1302 = vst.msk [vmem:[#allocation3 + $0x7c] sm:$0xf] %vm1270_vm6, %v1237_v19 }
 0x15c   : > { %v1432_v45 = vpop.permute.xlu0 %1431  ;;  %1734 = vrot.lane.b32.xlu1 %v4561_v44, %s3877_s24 }
 0x15d   : > { %1528 = vst.msk [vmem:[#allocation3] sm:$0xf] %vm1527_vm8, %v1432_v45  ;;  %v1571_v45 = vld [vmem:[#allocation2 + $0x9a] sm:$0xff] }
 0x15e   : > { %1954 = vrot.lane.b32.xlu0 %v3639_v32, %s3878_s25  ;;  %v1434_v33 = vpop.permute.xlu1 %1433  ;;  %v1586_v32 = vld [vmem:[#allocation2 + $0x152] sm:$0xff] }
 0x15f   : > { %1529 = vst.msk [vmem:[#allocation3 + $0x4] sm:$0xf] %vm1527_vm8, %v1434_v33  ;;  %v4664_v19 = vpack.c.bf16 %v1586_v32, %v1586_v32  ;;  %v1587_v33 = vld [vmem:[#allocation2 + $0x15a] sm:$0xff]  ;;  %v3725_v32 = vpack.c.bf16 %v2358_v31, %v2358_v31 }
 0x160   : > { %v1436_v63 = vpop.permute.xlu0 %1435  ;;  %1956 = vrot.lane.b32.xlu1 %v3640_v47, %s3878_s25  ;;  %v4667_v47 = vpack.c.bf16 %v1571_v45, %v1571_v45  ;;  %v4675_v53 = vpack.c.bf16 %v1587_v33, %v1587_v33  ;;  %v1317_v33 = vld [vmem:[#allocation2 + $0xc1] sm:$0xff] }
 0x161   : > { %1530 = vst.msk [vmem:[#allocation3 + $0x8] sm:$0xf] %vm1527_vm8, %v1436_v63 }
 0x162   : > { %1986 = vrot.lane.b32.xlu0 %v4157_v60, %s3878_s25  ;;  %v1438_v56 = vpop.permute.xlu1 %1437 }
 0x163   : > { %1531 = vst.msk [vmem:[#allocation3 + $0xc] sm:$0xf] %vm1527_vm8, %v1438_v56  ;;  %v1842_v56 = vld [vmem:[#allocation2 + $0x150] sm:$0xff] }
 0x164   : > { %v1440_v6 = vpop.permute.xlu0 %1439  ;;  %1988 = vrot.lane.b32.xlu1 %v4159_v61, %s3878_s25 }
 0x165   : > { %1532 = vst.msk [vmem:[#allocation3 + $0x10] sm:$0xf] %vm1527_vm8, %v1440_v6  ;;  %v3643_v6 = vpack.c.bf16 %v1826_v48, %v1826_v48 }
 0x166   : > { %1958 = vrot.lane.b32.xlu0 %v3641_v52, %s3878_s25  ;;  %v1442_v59 = vpop.permute.xlu1 %1441 }
 0x167   : > { %1533 = vst.msk [vmem:[#allocation3 + $0x14] sm:$0xf] %vm1527_vm8, %v1442_v59 }
 0x168   : > { %v1444_v22 = vpop.permute.xlu0 %1443  ;;  %1960 = vrot.lane.b32.xlu1 %v3642_v57, %s3878_s25 }
 0x169   : > { %1534 = vst.msk [vmem:[#allocation3 + $0x18] sm:$0xf] %vm1527_vm8, %v1444_v22  ;;  %v1827_v22 = vld [vmem:[#allocation2 + $0x98] sm:$0xff] }
 0x16a   : > { %1990 = vrot.lane.b32.xlu0 %v4171_v5, %s3878_s25  ;;  %v1446_v24 = vpop.permute.xlu1 %1445  ;;  %v2097_v5 = vld [vmem:[#allocation2 + $0x139] sm:$0xff] }
 0x16b   : > { %1535 = vst.msk [vmem:[#allocation3 + $0x1c] sm:$0xf] %vm1527_vm8, %v1446_v24  ;;  %v3644_v24 = vpack.c.bf16 %v1827_v22, %v1827_v22  ;;  %v1318_v22 = vld [vmem:[#allocation2 + $0xc9] sm:$0xff] }
 0x16c   : > { %v1448_v60 = vpop.permute.xlu0 %1447  ;;  %1992 = vrot.lane.b32.xlu1 %v4173_v7, %s3878_s25  ;;  %v3689_v7 = vpack.c.bf16 %v2097_v5, %v2097_v5  ;;  %v1843_v5 = vld [vmem:[#allocation2 + $0x158] sm:$0xff] }
 0x16d   : > { %1536 = vst.msk [vmem:[#allocation3 + $0x20] sm:$0xf] %vm1527_vm8, %v1448_v60  ;;  %v3659_v60 = vpack.c.bf16 %v1842_v56, %v1842_v56  ;;  %v1333_v56 = vld [vmem:[#allocation2 + $0x181] sm:$0xff] }
 0x16e   : > { %2211 = vrot.lane.b32.xlu0 %v4384_v23, %s3879_s26  ;;  %v1450_v28 = vpop.permute.xlu1 %1449 }
 0x16f   : > { %1537 = vst.msk [vmem:[#allocation3 + $0x24] sm:$0xf] %vm1527_vm8, %v1450_v28 }
 0x170   : > { %v1464_v61 = vpop.permute.xlu0 %1463  ;;  %2213 = vrot.lane.b32.xlu1 %v4398_v36, %s3879_s26  ;;  %v3690_v36 = vpack.c.bf16 %v2098_v34, %v2098_v34 }
 0x171   : > { %1544 = vst.msk [vmem:[#allocation3 + $0x40] sm:$0xf] %vm1527_vm8, %v1464_v61  ;;  %v1828_v61 = vld [vmem:[#allocation2 + $0xa8] sm:$0xff] }
 0x172   : > { %2243 = vrot.lane.b32.xlu0 %v4524_v1, %s3879_s26  ;;  %v1466_v30 = vpop.permute.xlu1 %1465  ;;  %v3722_v1 = vpack.c.bf16 %v2355_v58, %v2355_v58 }
 0x173   : > { %1545 = vst.msk [vmem:[#allocation3 + $0x44] sm:$0xf] %vm1527_vm8, %v1466_v30  ;;  %v3645_v30 = vpack.c.bf16 %v1828_v61, %v1828_v61 }
 0x174   : > { %v1468_v29 = vpop.permute.xlu0 %1467  ;;  %2245 = vrot.lane.b32.xlu1 %v4533_v25, %s3879_s26  ;;  %v4629_v25 = vpack.c.bf16 %v1313_v12, %v1313_v12 }
 0x175   : > { %1546 = vst.msk [vmem:[#allocation3 + $0x48] sm:$0xf] %vm1527_vm8, %v1468_v29 }
 0x176   : > { %2215 = vrot.lane.b32.xlu0 %v4394_v35, %s3879_s26  ;;  %v1470_v41 = vpop.permute.xlu1 %1469 }
 0x177   : > { %1547 = vst.msk [vmem:[#allocation3 + $0x4c] sm:$0xf] %vm1527_vm8, %v1470_v41  ;;  %v1829_v41 = vld [vmem:[#allocation2 + $0xb0] sm:$0xff] }
 0x178   : > { %v1689_v23 = vpop.permute.xlu0 %1688  ;;  %2217 = vrot.lane.b32.xlu1 %v4406_v62, %s3879_s26  ;;  %v3705_v62 = vpack.c.bf16 %v2338_v43, %v2338_v43 }
 0x179   : > { %1785 = vst.msk [vmem:[#allocation3] sm:$0xf] %vm1784_vm9, %v1689_v23  ;;  %v1844_v23 = vld [vmem:[#allocation2 + $0x168] sm:$0xff] }
 0x17a   : > { %2247 = vrot.lane.b32.xlu0 %v3689_v7, %s3879_s26  ;;  %v1691_v35 = vpop.permute.xlu1 %1690 }
 0x17b   : > { %1786 = vst.msk [vmem:[#allocation3 + $0x4] sm:$0xf] %vm1784_vm9, %v1691_v35  ;;  %v3646_v35 = vpack.c.bf16 %v1829_v41, %v1829_v41 }
 0x17c   : > { %v1721_v42 = vpop.permute.xlu0 %1720  ;;  %2249 = vrot.lane.b32.xlu1 %v3690_v36, %s3879_s26 }
 0x17d   : > { %1801 = vst.msk [vmem:[#allocation3 + $0x40] sm:$0xf] %vm1784_vm9, %v1721_v42  ;;  %v3661_v42 = vpack.c.bf16 %v1844_v23, %v1844_v23  ;;  %v1574_v23 = vld [vmem:[#allocation2 + $0xc2] sm:$0xff] }
 0x17e   : > { %2468 = vrot.lane.b32.xlu0 %v4543_v49, %s3880_s4  ;;  %v1723_v2 = vpop.permute.xlu1 %1722  ;;  %v4639_v49 = vpack.c.bf16 %v1314_v10, %v1314_v10 }
 0x17f   : > { %1802 = vst.msk [vmem:[#allocation3 + $0x44] sm:$0xf] %vm1784_vm9, %v1723_v2 }
 0x180   : > { %v1693_v0 = vpop.permute.xlu0 %1692  ;;  %2470 = vrot.lane.b32.xlu1 %v4553_v17, %s3880_s4 }
 0x181   : > { %1787 = vst.msk [vmem:[#allocation3 + $0x8] sm:$0xf] %vm1784_vm9, %v1693_v0  ;;  %v1845_v0 = vld [vmem:[#allocation2 + $0x170] sm:$0xff] }
 0x182   : > { %2500 = vrot.lane.b32.xlu0 %v4550_v18, %s3880_s4  ;;  %v1695_v15 = vpop.permute.xlu1 %1694  ;;  %v3662_v4 = vpack.c.bf16 %v1845_v0, %v1845_v0 }
 0x183   : > { %1788 = vst.msk [vmem:[#allocation3 + $0xc] sm:$0xf] %vm1784_vm9, %v1695_v15 }
 0x184   : > { %v1725_v13 = vpop.permute.xlu0 %1724  ;;  %2502 = vrot.lane.b32.xlu1 %v4561_v44, %s3880_s4 }
 0x185   : > { %1803 = vst.msk [vmem:[#allocation3 + $0x48] sm:$0xf] %vm1784_vm9, %v1725_v13 }
 0x186   : > { %2472 = vrot.lane.b32.xlu0 %v3705_v62, %s3880_s4  ;;  %v1727_v3 = vpop.permute.xlu1 %1726 }
 0x187   : > { %1804 = vst.msk [vmem:[#allocation3 + $0x4c] sm:$0xf] %vm1784_vm9, %v1727_v3 }
 0x188   : > { %v1947_v55 = vpop.permute.xlu0 %1946  ;;  %2474 = vrot.lane.b32.xlu1 %v3706_v26, %s3880_s4 }
 0x189   : > { %2043 = vst.msk [vmem:[#allocation3] sm:$0xf] %vm2042_vm10, %v1947_v55 }
 0x18a   : > { %2504 = vrot.lane.b32.xlu0 %v3721_v40, %s3880_s4  ;;  %v1949_v9 = vpop.permute.xlu1 %1948 }
 0x18b   : > { %2044 = vst.msk [vmem:[#allocation3 + $0x4] sm:$0xf] %vm2042_vm10, %v1949_v9 }
 0x18c   : > { %v1979_v8 = vpop.permute.xlu0 %1978  ;;  %2506 = vrot.lane.b32.xlu1 %v3722_v1, %s3880_s4 }
 0x18d   : > { %2059 = vst.msk [vmem:[#allocation3 + $0x40] sm:$0xf] %vm2042_vm10, %v1979_v8  ;;  %v2086_v8 = vld [vmem:[#allocation2 + $0xb1] sm:$0xff] }
 0x18e   : > { %1479 = vrot.lane.b32.xlu0 %v3689_v7, %s3876_s23  ;;  %v1981_v37 = vpop.permute.xlu1 %1980  ;;  %v3660_v7 = vpack.c.bf16 %v1843_v5, %v1843_v5 }
 0x18f   : > { %2060 = vst.msk [vmem:[#allocation3 + $0x44] sm:$0xf] %vm2042_vm10, %v1981_v37  ;;  %v2102_v37 = vld [vmem:[#allocation2 + $0x171] sm:$0xff] }
 0x190   : > { %v1951_v21 = vpop.permute.xlu0 %1950  ;;  %1481 = vrot.lane.b32.xlu1 %v3690_v36, %s3876_s23 }
 0x191   : > { %2045 = vst.msk [vmem:[#allocation3 + $0x8] sm:$0xf] %vm2042_vm10, %v1951_v21  ;;  %v3678_v21 = vpack.c.bf16 %v2086_v8, %v2086_v8 }
 0x192   : > { %1451 = vrot.lane.b32.xlu0 %v4629_v25, %s3876_s23  ;;  %v1953_v50 = vpop.permute.xlu1 %1952 }
 0x193   : > { %2046 = vst.msk [vmem:[#allocation3 + $0xc] sm:$0xf] %vm2042_vm10, %v1953_v50  ;;  %v2342_v50 = vld [vmem:[#allocation2 + $0xaa] sm:$0xff] }
 0x194   : > { %v1983_v27 = vpop.permute.xlu0 %1982  ;;  %1453 = vrot.lane.b32.xlu1 %v4639_v49, %s3876_s23 }
 0x195   : > { %2061 = vst.msk [vmem:[#allocation3 + $0x48] sm:$0xf] %vm2042_vm10, %v1983_v27 }
 0x196   : > { %1483 = vrot.lane.b32.xlu0 %v4636_v11, %s3876_s23  ;;  %v1985_v17 = vpop.permute.xlu1 %1984 }
 0x197   : > { %2062 = vst.msk [vmem:[#allocation3 + $0x4c] sm:$0xf] %vm2042_vm10, %v1985_v17  ;;  %v3709_v17 = vpack.c.bf16 %v2342_v50, %v2342_v50 }
 0x198   : > { %v2204_v18 = vpop.permute.xlu0 %2203  ;;  %1485 = vrot.lane.b32.xlu1 %v4647_v51, %s3876_s23 }
 0x199   : > { %2300 = vst.msk [vmem:[#allocation3] sm:$0xf] %vm2299_vm11, %v2204_v18 }
 0x19a   : > { %1704 = vrot.lane.b32.xlu0 %v3705_v62, %s3877_s24  ;;  %v2206_v39 = vpop.permute.xlu1 %2205 }
 0x19b   : > { %2301 = vst.msk [vmem:[#allocation3 + $0x4] sm:$0xf] %vm2299_vm11, %v2206_v39  ;;  %v2343_v39 = vld [vmem:[#allocation2 + $0xb2] sm:$0xff] }
 0x19c   : > { %v2236_v38 = vpop.permute.xlu0 %2235  ;;  %1706 = vrot.lane.b32.xlu1 %v3706_v26, %s3877_s24 }
 0x19d   : > { %2316 = vst.msk [vmem:[#allocation3 + $0x40] sm:$0xf] %vm2299_vm11, %v2236_v38 }
 0x19e   : > { %1736 = vrot.lane.b32.xlu0 %v3721_v40, %s3877_s24  ;;  %v2238_v46 = vpop.permute.xlu1 %2237  ;;  %v2085_v40 = vld [vmem:[#allocation2 + $0xa9] sm:$0xff] }
 0x19f   : > { %2317 = vst.msk [vmem:[#allocation3 + $0x44] sm:$0xf] %vm2299_vm11, %v2238_v46  ;;  %v3677_v3 = vpack.c.bf16 %v2085_v40, %v2085_v40  ;;  %v2359_v46 = vld [vmem:[#allocation2 + $0x172] sm:$0xff] }
 0x1a0   : > { %v2208_v44 = vpop.permute.xlu0 %2207  ;;  %1738 = vrot.lane.b32.xlu1 %v3722_v1, %s3877_s24  ;;  %v2101_v1 = vld [vmem:[#allocation2 + $0x169] sm:$0xff] }
 0x1a1   : > { %2302 = vst.msk [vmem:[#allocation3 + $0x8] sm:$0xf] %vm2299_vm11, %v2208_v44  ;;  %v3693_v20 = vpack.c.bf16 %v2101_v1, %v2101_v1  ;;  %v3710_v44 = vpack.c.bf16 %v2343_v39, %v2343_v39 }
 0x1a2   : > { %1708 = vrot.lane.b32.xlu0 %v4657_v54, %s3877_s24  ;;  %v2210_v52 = vpop.permute.xlu1 %2209 }
 0x1a3   : > { %2303 = vst.msk [vmem:[#allocation3 + $0xc] sm:$0xf] %vm2299_vm11, %v2210_v52 }
 0x1a4   : > { %v2240_v63 = vpop.permute.xlu0 %2239  ;;  %1710 = vrot.lane.b32.xlu1 %v4667_v47, %s3877_s24 }
 0x1a5   : > { %2318 = vst.msk [vmem:[#allocation3 + $0x48] sm:$0xf] %vm2299_vm11, %v2240_v63 }
 0x1a6   : > { %1740 = vrot.lane.b32.xlu0 %v4664_v19, %s3877_s24  ;;  %v2242_v59 = vpop.permute.xlu1 %2241 }
 0x1a7   : > { %2319 = vst.msk [vmem:[#allocation3 + $0x4c] sm:$0xf] %vm2299_vm11, %v2242_v59 }
 0x1a8   : > { %v2461_v57 = vpop.permute.xlu0 %2460  ;;  %1742 = vrot.lane.b32.xlu1 %v4675_v53, %s3877_s24 }
 0x1a9   : > { %2557 = vst.msk [vmem:[#allocation3] sm:$0xf] %vm2556_vm12, %v2461_v57 }
 0x1aa   : > { %1962 = vrot.lane.b32.xlu0 %v3643_v6, %s3878_s25  ;;  %v2463_v29 = vpop.permute.xlu1 %2462 }
 0x1ab   : > { %2558 = vst.msk [vmem:[#allocation3 + $0x4] sm:$0xf] %vm2556_vm12, %v2463_v29 }
 0x1ac   : > { %v2493_v28 = vpop.permute.xlu0 %2492  ;;  %1964 = vrot.lane.b32.xlu1 %v3644_v24, %s3878_s25  ;;  %v4755_v24 = vpack.c.bf16 %v1318_v22, %v1318_v22 }
 0x1ad   : > { %2573 = vst.msk [vmem:[#allocation3 + $0x40] sm:$0xf] %vm2556_vm12, %v2493_v28  ;;  %v1334_v28 = vld [vmem:[#allocation2 + $0x189] sm:$0xff] }
 0x1ae   : > { %1994 = vrot.lane.b32.xlu0 %v3659_v60, %s3878_s25  ;;  %v2495_v36 = vpop.permute.xlu1 %2494  ;;  %v4752_v60 = vpack.c.bf16 %v1333_v56, %v1333_v56  ;;  %v4763_v29 = vpack.c.bf16 %v1334_v28, %v1334_v28 }
 0x1af   : > { %2574 = vst.msk [vmem:[#allocation3 + $0x44] sm:$0xf] %vm2556_vm12, %v2495_v36  ;;  %v4773_v36 = vpack.c.bf16 %v1574_v23, %v1574_v23  ;;  %v2362_v23 = vld [vmem:[#allocation2 + $0x19a] sm:$0xff] }
 0x1b0   : > { %v2465_v34 = vpop.permute.xlu0 %2464  ;;  %1996 = vrot.lane.b32.xlu1 %v3660_v7, %s3878_s25 }
 0x1b1   : > { %2559 = vst.msk [vmem:[#allocation3 + $0x8] sm:$0xf] %vm2556_vm12, %v2465_v34 }
 0x1b2   : > { %1966 = vrot.lane.b32.xlu0 %v3645_v30, %s3878_s25  ;;  %v2467_v2 = vpop.permute.xlu1 %2466  ;;  %v3831_v62 = vld [vmem:[#allocation3] sm:$0xff]  }
 0x1b3   : > { %2560 = vst.msk [vmem:[#allocation3 + $0xc] sm:$0xf] %vm2556_vm12, %v2467_v2  ;;  %3756 = vmatprep.mubr.msk.bf16.mxu0 %vm2728_vm13, %v3831_v62 }
 0x1b4   : > { %v2497_v43 = vpop.permute.xlu0 %2496  ;;  %1968 = vrot.lane.b32.xlu1 %v3646_v35, %s3878_s25 }
 0x1b5   : > { %2575 = vst.msk [vmem:[#allocation3 + $0x48] sm:$0xf] %vm2556_vm12, %v2497_v43  ;;  %v1575_v43 = vld [vmem:[#allocation2 + $0xca] sm:$0xff] }
 0x1b6   : > { %1998 = vrot.lane.b32.xlu0 %v3661_v42, %s3878_s25  ;;  %v2499_v14 = vpop.permute.xlu1 %2498  ;;  %v3833_v15 = vld [vmem:[#allocation3 + $0x40] sm:$0xff]   ;;  %v1590_v42 = vld [vmem:[#allocation2 + $0x182] sm:$0xff]  ;;  %v4783_v62 = vpack.c.bf16 %v1575_v43, %v1575_v43 }
 0x1b7   : > { %2576 = vst.msk [vmem:[#allocation3 + $0x4c] sm:$0xf] %vm2556_vm12, %v2499_v14  ;;  %3772 = vmatprep.mubr.msk.bf16.mxu1 %vm2728_vm13, %v3833_v15  ;;  %v4780_v2 = vpack.c.bf16 %v1590_v42, %v1590_v42  ;;  %v1591_v14 = vld [vmem:[#allocation2 + $0x18a] sm:$0xff]  ;;  %v3729_v42 = vpack.c.bf16 %v2362_v23, %v2362_v23 }
 0x1b8   : > { %v1472_v13 = vpop.permute.xlu0 %1471  ;;  %2000 = vrot.lane.b32.xlu1 %v3662_v4, %s3878_s25  ;;  %v1830_v4 = vld [vmem:[#allocation2 + $0xc0] sm:$0xff] }
 0x1b9   : > { %1548 = vst.msk [vmem:[#allocation3 + $0x50] sm:$0xf] %vm1527_vm8, %v1472_v13  ;;  %v3647_v40 = vpack.c.bf16 %v1830_v4, %v1830_v4 }
 0x1ba   : > { %2219 = vrot.lane.b32.xlu0 %v4629_v25, %s3879_s26  ;;  %v1474_v55 = vpop.permute.xlu1 %1473  ;;  %v3834_v58 = vld [vmem:[#allocation3 + $0x8] sm:$0xff]  }
 0x1bb   : > { %1549 = vst.msk [vmem:[#allocation3 + $0x54] sm:$0xf] %vm1527_vm8, %v1474_v55  ;;  %3757 = vmatmul.mubr.msk.bf16.vlgmr.msra.gmra.mxu0 %vm2728_vm13, %v3834_v58  ;;  %v1846_v55 = vld [vmem:[#allocation2 + $0x180] sm:$0xff] }
 0x1bc   : > { %v1476_v26 = vpop.permute.xlu0 %1475  ;;  %2221 = vrot.lane.b32.xlu1 %v4639_v49, %s3879_s26  ;;  %v3694_v49 = vpack.c.bf16 %v2102_v37, %v2102_v37 }
 0x1bd   : > { %1550 = vst.msk [vmem:[#allocation3 + $0x58] sm:$0xf] %vm1527_vm8, %v1476_v26  ;;  %v4791_v26 = vpack.c.bf16 %v1591_v14, %v1591_v14 }
 0x1be   : > { %2251 = vrot.lane.b32.xlu0 %v4636_v11, %s3879_s26  ;;  %v1478_v9 = vpop.permute.xlu1 %1477  ;;  %v3835_v25 = vld [vmem:[#allocation3 + $0x48] sm:$0xff]  }
 0x1bf   : > { %1551 = vst.msk [vmem:[#allocation3 + $0x5c] sm:$0xf] %vm1527_vm8, %v1478_v9  ;;  %3773 = vmatmul.mubr.msk.bf16.vlgmr.msra.gmra.mxu1 %vm2728_vm13, %v3835_v25  ;;  %v1832_v9 = vld [vmem:[#allocation2 + $0xd8] sm:$0xff] }
 0x1c0   : > { %v1697_v12 = vpop.permute.xlu0 %1696  ;;  %2253 = vrot.lane.b32.xlu1 %v4647_v51, %s3879_s26  ;;  %v3649_v37 = vpack.c.bf16 %v1832_v9, %v1832_v9 }
 0x1c1   : > { %1789 = vst.msk [vmem:[#allocation3 + $0x10] sm:$0xf] %vm1784_vm9, %v1697_v12  ;;  %v3663_v12 = vpack.c.bf16 %v1846_v55, %v1846_v55 }
 0x1c2   : > { %2223 = vrot.lane.b32.xlu0 %v3677_v3, %s3879_s26  ;;  %v1699_v11 = vpop.permute.xlu1 %1698 }
 0x1c3   : > { %1790 = vst.msk [vmem:[#allocation3 + $0x14] sm:$0xf] %vm1784_vm9, %v1699_v11 }
 0x1c4   : > { %v1729_v10 = vpop.permute.xlu0 %1728  ;;  %2225 = vrot.lane.b32.xlu1 %v3678_v21, %s3879_s26 }
 0x1c5   : > { %1805 = vst.msk [vmem:[#allocation3 + $0x50] sm:$0xf] %vm1784_vm9, %v1729_v10 }
 0x1c6   : > { %2255 = vrot.lane.b32.xlu0 %v3693_v20, %s3879_s26  ;;  %v1731_v16 = vpop.permute.xlu1 %1730 }
 0x1c7   : > { %1806 = vst.msk [vmem:[#allocation3 + $0x54] sm:$0xf] %vm1784_vm9, %v1731_v16  ;;  %v1833_v16 = vld [vmem:[#allocation2 + $0xe0] sm:$0xff] }
 0x1c8   : > { %v1701_v27 = vpop.permute.xlu0 %1700  ;;  %2257 = vrot.lane.b32.xlu1 %v3694_v49, %s3879_s26 }
 0x1c9   : > { %1791 = vst.msk [vmem:[#allocation3 + $0x18] sm:$0xf] %vm1784_vm9, %v1701_v27 }
 0x1ca   : > { %2476 = vrot.lane.b32.xlu0 %v4657_v54, %s3880_s4  ;;  %v1703_v18 = vpop.permute.xlu1 %1702 }
 0x1cb   : > { %1792 = vst.msk [vmem:[#allocation3 + $0x1c] sm:$0xf] %vm1784_vm9, %v1703_v18 }
 0x1cc   : > { %v1733_v51 = vpop.permute.xlu0 %1732  ;;  %2478 = vrot.lane.b32.xlu1 %v4667_v47, %s3880_s4  ;;  %v3726_v47 = vpack.c.bf16 %v2359_v46, %v2359_v46 }
 0x1cd   : > { %1807 = vst.msk [vmem:[#allocation3 + $0x58] sm:$0xf] %vm1784_vm9, %v1733_v51 }
 0x1ce   : > { %2508 = vrot.lane.b32.xlu0 %v4664_v19, %s3880_s4  ;;  %v1735_v54 = vpop.permute.xlu1 %1734 }
 0x1cf   : > { %1808 = vst.msk [vmem:[#allocation3 + $0x5c] sm:$0xf] %vm1784_vm9, %v1735_v54 }
 0x1d0   : > { %v1955_v38 = vpop.permute.xlu0 %1954  ;;  %2510 = vrot.lane.b32.xlu1 %v4675_v53, %s3880_s4  ;;  %v4745_v53 = vpack.c.bf16 %v1317_v33, %v1317_v33  ;;  %v2105_v33 = vld [vmem:[#allocation2 + $0x199] sm:$0xff] }
 0x1d1   : > { %2047 = vst.msk [vmem:[#allocation3 + $0x10] sm:$0xf] %vm2042_vm10, %v1955_v38  ;;  %v1849_v38 = vld [vmem:[#allocation2 + $0x1a0] sm:$0xff]  ;;  %v3697_v56 = vpack.c.bf16 %v2105_v33, %v2105_v33 }
 0x1d2   : > { %2480 = vrot.lane.b32.xlu0 %v3709_v17, %s3880_s4  ;;  %v1957_v19 = vpop.permute.xlu1 %1956 }
 0x1d3   : > { %2048 = vst.msk [vmem:[#allocation3 + $0x14] sm:$0xf] %vm2042_vm10, %v1957_v19  ;;  %v2089_v19 = vld [vmem:[#allocation2 + $0xd9] sm:$0xff] }
 0x1d4   : > { %v1987_v45 = vpop.permute.xlu0 %1986  ;;  %2482 = vrot.lane.b32.xlu1 %v3710_v44, %s3880_s4 }
 0x1d5   : > { %2063 = vst.msk [vmem:[#allocation3 + $0x50] sm:$0xf] %vm2042_vm10, %v1987_v45 }
 0x1d6   : > { %2512 = vrot.lane.b32.xlu0 %v3725_v32, %s3880_s4  ;;  %v1989_v63 = vpop.permute.xlu1 %1988 }
 0x1d7   : > { %2064 = vst.msk [vmem:[#allocation3 + $0x54] sm:$0xf] %vm2042_vm10, %v1989_v63  ;;  %v3681_v63 = vpack.c.bf16 %v2089_v19, %v2089_v19 }
 0x1d8   : > { %v1959_v48 = vpop.permute.xlu0 %1958  ;;  %2514 = vrot.lane.b32.xlu1 %v3726_v47, %s3880_s4 }
 0x1d9   : > { %2049 = vst.msk [vmem:[#allocation3 + $0x18] sm:$0xf] %vm2042_vm10, %v1959_v48 }
 0x1da   : > { %1455 = vrot.lane.b32.xlu0 %v3677_v3, %s3876_s23  ;;  %v1961_v6 = vpop.permute.xlu1 %1960  ;;  %v1831_v3 = vld [vmem:[#allocation2 + $0xc8] sm:$0xff] }
 0x1db   : > { %2050 = vst.msk [vmem:[#allocation3 + $0x1c] sm:$0xf] %vm2042_vm10, %v1961_v6  ;;  %v3648_v8 = vpack.c.bf16 %v1831_v3, %v1831_v3  ;;  %v2090_v6 = vld [vmem:[#allocation2 + $0xe1] sm:$0xff] }
 0x1dc   : > { %v1991_v52 = vpop.permute.xlu0 %1990  ;;  %1457 = vrot.lane.b32.xlu1 %v3678_v21, %s3876_s23 }
 0x1dd   : > { %2065 = vst.msk [vmem:[#allocation3 + $0x58] sm:$0xf] %vm2042_vm10, %v1991_v52 }
 0x1de   : > { %1487 = vrot.lane.b32.xlu0 %v3693_v20, %s3876_s23  ;;  %v1993_v59 = vpop.permute.xlu1 %1992  ;;  %v1847_v20 = vld [vmem:[#allocation2 + $0x188] sm:$0xff] }
 0x1df   : > { %2066 = vst.msk [vmem:[#allocation3 + $0x5c] sm:$0xf] %vm2042_vm10, %v1993_v59  ;;  %v3664_v11 = vpack.c.bf16 %v1847_v20, %v1847_v20  ;;  %v2106_v59 = vld [vmem:[#allocation2 + $0x1a1] sm:$0xff] }
 0x1e0   : > { %v2212_v57 = vpop.permute.xlu0 %2211  ;;  %1489 = vrot.lane.b32.xlu1 %v3694_v49, %s3876_s23  ;;  %v1848_v49 = vld [vmem:[#allocation2 + $0x198] sm:$0xff] }
 0x1e1   : > { %2304 = vst.msk [vmem:[#allocation3 + $0x10] sm:$0xf] %vm2299_vm11, %v2212_v57  ;;  %v3665_v18 = vpack.c.bf16 %v1848_v49, %v1848_v49  ;;  %v3682_v57 = vpack.c.bf16 %v2090_v6, %v2090_v6 }
 0x1e2   : > { %1459 = vrot.lane.b32.xlu0 %v4745_v53, %s3876_s23  ;;  %v2214_v5 = vpop.permute.xlu1 %2213 }
 0x1e3   : > { %2305 = vst.msk [vmem:[#allocation3 + $0x14] sm:$0xf] %vm2299_vm11, %v2214_v5  ;;  %v2346_v5 = vld [vmem:[#allocation2 + $0xda] sm:$0xff] }
 0x1e4   : > { %v2244_v61 = vpop.permute.xlu0 %2243  ;;  %1461 = vrot.lane.b32.xlu1 %v4755_v24, %s3876_s23 }
 0x1e5   : > { %2320 = vst.msk [vmem:[#allocation3 + $0x50] sm:$0xf] %vm2299_vm11, %v2244_v61 }
 0x1e6   : > { %1491 = vrot.lane.b32.xlu0 %v4752_v60, %s3876_s23  ;;  %v2246_v7 = vpop.permute.xlu1 %2245 }
 0x1e7   : > { %2321 = vst.msk [vmem:[#allocation3 + $0x54] sm:$0xf] %vm2299_vm11, %v2246_v7  ;;  %v3713_v7 = vpack.c.bf16 %v2346_v5, %v2346_v5 }
 0x1e8   : > { %v2216_v30 = vpop.permute.xlu0 %2215  ;;  %1493 = vrot.lane.b32.xlu1 %v4763_v29, %s3876_s23 }
 0x1e9   : > { %2306 = vst.msk [vmem:[#allocation3 + $0x18] sm:$0xf] %vm2299_vm11, %v2216_v30 }
 0x1ea   : > { %1712 = vrot.lane.b32.xlu0 %v3709_v17, %s3877_s24  ;;  %v2218_v41 = vpop.permute.xlu1 %2217  ;;  %v3650_v17 = vpack.c.bf16 %v1833_v16, %v1833_v16 }
 0x1eb   : > { %2307 = vst.msk [vmem:[#allocation3 + $0x1c] sm:$0xf] %vm2299_vm11, %v2218_v41  ;;  %v2347_v41 = vld [vmem:[#allocation2 + $0xe2] sm:$0xff] }
 0x1ec   : > { %v2248_v34 = vpop.permute.xlu0 %2247  ;;  %1714 = vrot.lane.b32.xlu1 %v3710_v44, %s3877_s24 }
 0x1ed   : > { %2322 = vst.msk [vmem:[#allocation3 + $0x58] sm:$0xf] %vm2299_vm11, %v2248_v34 }
 0x1ee   : > { %1744 = vrot.lane.b32.xlu0 %v3725_v32, %s3877_s24  ;;  %v2250_v0 = vpop.permute.xlu1 %2249  ;;  %v3666_v32 = vpack.c.bf16 %v1849_v38, %v1849_v38 }
 0x1ef   : > { %2323 = vst.msk [vmem:[#allocation3 + $0x5c] sm:$0xf] %vm2299_vm11, %v2250_v0  ;;  %v2363_v0 = vld [vmem:[#allocation2 + $0x1a2] sm:$0xff] }
 0x1f0   : > { %v2469_v35 = vpop.permute.xlu0 %2468  ;;  %1746 = vrot.lane.b32.xlu1 %v3726_v47, %s3877_s24 }
 0x1f1   : > { %2561 = vst.msk [vmem:[#allocation3 + $0x10] sm:$0xf] %vm2556_vm12, %v2469_v35  ;;  %v3714_v35 = vpack.c.bf16 %v2347_v41, %v2347_v41 }
 0x1f2   : > { %1716 = vrot.lane.b32.xlu0 %v4773_v36, %s3877_s24  ;;  %v2471_v15 = vpop.permute.xlu1 %2470 }
 0x1f3   : > { %2562 = vst.msk [vmem:[#allocation3 + $0x14] sm:$0xf] %vm2556_vm12, %v2471_v15 }
 0x1f4   : > { %v2501_v13 = vpop.permute.xlu0 %2500  ;;  %1718 = vrot.lane.b32.xlu1 %v4783_v62, %s3877_s24 }
 0x1f5   : > { %2577 = vst.msk [vmem:[#allocation3 + $0x50] sm:$0xf] %vm2556_vm12, %v2501_v13 }
 0x1f6   : > { %1748 = vrot.lane.b32.xlu0 %v4780_v2, %s3877_s24  ;;  %v2503_v1 = vpop.permute.xlu1 %2502 }
 0x1f7   : > { %2578 = vst.msk [vmem:[#allocation3 + $0x54] sm:$0xf] %vm2556_vm12, %v2503_v1 }
 0x1f8   : > { %v2473_v58 = vpop.permute.xlu0 %2472  ;;  %1750 = vrot.lane.b32.xlu1 %v4791_v26, %s3877_s24 }
 0x1f9   : > { %2563 = vst.msk [vmem:[#allocation3 + $0x18] sm:$0xf] %vm2556_vm12, %v2473_v58 }
 0x1fa   : > { %1970 = vrot.lane.b32.xlu0 %v3647_v40, %s3878_s25  ;;  %v2475_v21 = vpop.permute.xlu1 %2474  ;;  %v3836_v10 = vld [vmem:[#allocation3 + $0x10] sm:$0xff]  }
 0x1fb   : > { %2564 = vst.msk [vmem:[#allocation3 + $0x1c] sm:$0xf] %vm2556_vm12, %v2475_v21  ;;  %3760 = vmatprep.mubr.msk.bf16.mxu0 %vm2728_vm13, %v3836_v10 }
 0x1fc   : > { %v2505_v25 = vpop.permute.xlu0 %2504  ;;  %1972 = vrot.lane.b32.xlu1 %v3648_v8, %s3878_s25 }
 0x1fd   : > { %2579 = vst.msk [vmem:[#allocation3 + $0x58] sm:$0xf] %vm2556_vm12, %v2505_v25 }
 0x1fe   : > { %2002 = vrot.lane.b32.xlu0 %v3663_v12, %s3878_s25  ;;  %v2507_v50 = vpop.permute.xlu1 %2506  ;;  %v3837_v51 = vld [vmem:[#allocation3 + $0x50] sm:$0xff]  }
 0x1ff   : > { %2580 = vst.msk [vmem:[#allocation3 + $0x5c] sm:$0xf] %vm2556_vm12, %v2507_v50  ;;  %3776 = vmatprep.mubr.msk.bf16.mxu1 %vm2728_vm13, %v3837_v51 }
 0x200   : > { %v1480_v27 = vpop.permute.xlu0 %1479  ;;  %2004 = vrot.lane.b32.xlu1 %v3664_v11, %s3878_s25 }
 0x201   : > { %1552 = vst.msk [vmem:[#allocation3 + $0x60] sm:$0xf] %vm1527_vm8, %v1480_v27 }
 0x202   : > { %1974 = vrot.lane.b32.xlu0 %v3649_v37, %s3878_s25  ;;  %v1482_v39 = vpop.permute.xlu1 %1481  ;;  %v3838_v54 = vld [vmem:[#allocation3 + $0x18] sm:$0xff]  }
 0x203   : > { %1553 = vst.msk [vmem:[#allocation3 + $0x64] sm:$0xf] %vm1527_vm8, %v1482_v39  ;;  %3761 = vmatmul.mubr.msk.bf16.gmra.mxu0 %vm2728_vm13, %v3838_v54 }
 0x204   : > { %v1452_v31 = vpop.permute.xlu0 %1451  ;;  %1976 = vrot.lane.b32.xlu1 %v3650_v17, %s3878_s25 }
 0x205   : > { %1538 = vst.msk [vmem:[#allocation3 + $0x28] sm:$0xf] %vm1527_vm8, %v1452_v31 }
 0x206   : > { %2006 = vrot.lane.b32.xlu0 %v3665_v18, %s3878_s25  ;;  %v1454_v45 = vpop.permute.xlu1 %1453  ;;  %v3839_v46 = vld [vmem:[#allocation3 + $0x58] sm:$0xff]  }
 0x207   : > { %1539 = vst.msk [vmem:[#allocation3 + $0x2c] sm:$0xf] %vm1527_vm8, %v1454_v45  ;;  %3777 = vmatmul.mubr.msk.bf16.gmra.mxu1 %vm2728_vm13, %v3839_v46 }
 0x208   : > { %v1484_v44 = vpop.permute.xlu0 %1483  ;;  %2008 = vrot.lane.b32.xlu1 %v3666_v32, %s3878_s25 }
 0x209   : > { %1554 = vst.msk [vmem:[#allocation3 + $0x68] sm:$0xf] %vm1527_vm8, %v1484_v44 }
 0x20a   : > { %2227 = vrot.lane.b32.xlu0 %v4745_v53, %s3879_s26  ;;  %v1486_v48 = vpop.permute.xlu1 %1485 }
 0x20b   : > { %1555 = vst.msk [vmem:[#allocation3 + $0x6c] sm:$0xf] %vm1527_vm8, %v1486_v48 }
 0x20c   : > { %v1705_v47 = vpop.permute.xlu0 %1704  ;;  %2229 = vrot.lane.b32.xlu1 %v4755_v24, %s3879_s26  ;;  %v3698_v24 = vpack.c.bf16 %v2106_v59, %v2106_v59 }
 0x20d   : > { %1793 = vst.msk [vmem:[#allocation3 + $0x20] sm:$0xf] %vm1784_vm9, %v1705_v47 }
 0x20e   : > { %2259 = vrot.lane.b32.xlu0 %v4752_v60, %s3879_s26  ;;  %v1707_v53 = vpop.permute.xlu1 %1706 }
 0x20f   : > { %1794 = vst.msk [vmem:[#allocation3 + $0x24] sm:$0xf] %vm1784_vm9, %v1707_v53 }
 0x210   : > { %v1737_v52 = vpop.permute.xlu0 %1736  ;;  %2261 = vrot.lane.b32.xlu1 %v4763_v29, %s3879_s26 }
 0x211   : > { %1809 = vst.msk [vmem:[#allocation3 + $0x60] sm:$0xf] %vm1784_vm9, %v1737_v52 }
 0x212   : > { %2231 = vrot.lane.b32.xlu0 %v3681_v63, %s3879_s26  ;;  %v1739_v60 = vpop.permute.xlu1 %1738 }
 0x213   : > { %1810 = vst.msk [vmem:[#allocation3 + $0x64] sm:$0xf] %vm1784_vm9, %v1739_v60 }
 0x214   : > { %v1709_v22 = vpop.permute.xlu0 %1708  ;;  %2233 = vrot.lane.b32.xlu1 %v3682_v57, %s3879_s26 }
 0x215   : > { %1795 = vst.msk [vmem:[#allocation3 + $0x28] sm:$0xf] %vm1784_vm9, %v1709_v22 }
 0x216   : > { %2263 = vrot.lane.b32.xlu0 %v3697_v56, %s3879_s26  ;;  %v1711_v28 = vpop.permute.xlu1 %1710 }
 0x217   : > { %1796 = vst.msk [vmem:[#allocation3 + $0x2c] sm:$0xf] %vm1784_vm9, %v1711_v28 }
 0x218   : > { %v1741_v61 = vpop.permute.xlu0 %1740  ;;  %2265 = vrot.lane.b32.xlu1 %v3698_v24, %s3879_s26 }
 0x219   : > { %1811 = vst.msk [vmem:[#allocation3 + $0x68] sm:$0xf] %vm1784_vm9, %v1741_v61  ;;  %v4904_v61 = vld [vmem:[%s5041_s2] ss:$0 sm:$0xff] }
 0x21a   : > { %2484 = vrot.lane.b32.xlu0 %v4773_v36, %s3880_s4  ;;  %v1743_v30 = vpop.permute.xlu1 %1742 }
 0x21b   : > { %1812 = vst.msk [vmem:[#allocation3 + $0x6c] sm:$0xf] %vm1784_vm9, %v1743_v30 }
 0x21c   : > { %v1963_v29 = vpop.permute.xlu0 %1962  ;;  %2486 = vrot.lane.b32.xlu1 %v4783_v62, %s3880_s4  ;;  %v3730_v62 = vpack.c.bf16 %v2363_v0, %v2363_v0 }
 0x21d   : > { %2051 = vst.msk [vmem:[#allocation3 + $0x20] sm:$0xf] %vm2042_vm10, %v1963_v29 }
 0x21e   : > { %2516 = vrot.lane.b32.xlu0 %v4780_v2, %s3880_s4  ;;  %v1965_v36 = vpop.permute.xlu1 %1964 }
 0x21f   : > { %2052 = vst.msk [vmem:[#allocation3 + $0x24] sm:$0xf] %vm2042_vm10, %v1965_v36 }
 0x220   : > { %v1995_v34 = vpop.permute.xlu0 %1994  ;;  %2518 = vrot.lane.b32.xlu1 %v4791_v26, %s3880_s4 }
 0x221   : > { %2067 = vst.msk [vmem:[#allocation3 + $0x60] sm:$0xf] %vm2042_vm10, %v1995_v34 }
 0x222   : > { %2488 = vrot.lane.b32.xlu0 %v3713_v7, %s3880_s4  ;;  %v1997_v2 = vpop.permute.xlu1 %1996 }
 0x223   : > { %2068 = vst.msk [vmem:[#allocation3 + $0x64] sm:$0xf] %vm2042_vm10, %v1997_v2 }
 0x224   : > { %v1967_v43 = vpop.permute.xlu0 %1966  ;;  %2490 = vrot.lane.b32.xlu1 %v3714_v35, %s3880_s4 }
 0x225   : > { %2053 = vst.msk [vmem:[#allocation3 + $0x28] sm:$0xf] %vm2042_vm10, %v1967_v43 }
 0x226   : > { %2520 = vrot.lane.b32.xlu0 %v3729_v42, %s3880_s4  ;;  %v1969_v13 = vpop.permute.xlu1 %1968 }
 0x227   : > { %2054 = vst.msk [vmem:[#allocation3 + $0x2c] sm:$0xf] %vm2042_vm10, %v1969_v13 }
 0x228   : > { %v1999_v4 = vpop.permute.xlu0 %1998  ;;  %2522 = vrot.lane.b32.xlu1 %v3730_v62, %s3880_s4 }
 0x229   : > { %2069 = vst.msk [vmem:[#allocation3 + $0x68] sm:$0xf] %vm2042_vm10, %v1999_v4 }
 0x22a   : > { %v2001_v15 = vpop.permute.xlu1 %2000 }
 0x22b   : > { %2070 = vst.msk [vmem:[#allocation3 + $0x6c] sm:$0xf] %vm2042_vm10, %v2001_v15 }
 0x22c   : > { %v2220_v14 = vpop.permute.xlu0 %2219 }
 0x22d   : > { %2308 = vst.msk [vmem:[#allocation3 + $0x20] sm:$0xf] %vm2299_vm11, %v2220_v14 }
 0x22e   : > { %v2222_v26 = vpop.permute.xlu1 %2221 }
 0x22f   : > { %2309 = vst.msk [vmem:[#allocation3 + $0x24] sm:$0xf] %vm2299_vm11, %v2222_v26 }
 0x230   : > { %v2252_v40 = vpop.permute.xlu0 %2251 }
 0x231   : > { %2324 = vst.msk [vmem:[#allocation3 + $0x60] sm:$0xf] %vm2299_vm11, %v2252_v40 }
 0x232   : > { %v2254_v58 = vpop.permute.xlu1 %2253 }
 0x233   : > { %2325 = vst.msk [vmem:[#allocation3 + $0x64] sm:$0xf] %vm2299_vm11, %v2254_v58 }
 0x234   : > { %v2224_v55 = vpop.permute.xlu0 %2223 }
 0x235   : > { %2310 = vst.msk [vmem:[#allocation3 + $0x28] sm:$0xf] %vm2299_vm11, %v2224_v55 }
 0x236   : > { %v2226_v1 = vpop.permute.xlu1 %2225 }
 0x237   : > { %2311 = vst.msk [vmem:[#allocation3 + $0x2c] sm:$0xf] %vm2299_vm11, %v2226_v1 }
 0x238   : > { %v2256_v3 = vpop.permute.xlu0 %2255 }
 0x239   : > { %2326 = vst.msk [vmem:[#allocation3 + $0x68] sm:$0xf] %vm2299_vm11, %v2256_v3 }
 0x23a   : > { %v2258_v8 = vpop.permute.xlu1 %2257 }
 0x23b   : > { %2327 = vst.msk [vmem:[#allocation3 + $0x6c] sm:$0xf] %vm2299_vm11, %v2258_v8 }
 0x23c   : > { %v2477_v12 = vpop.permute.xlu0 %2476 }
 0x23d   : > { %2565 = vst.msk [vmem:[#allocation3 + $0x20] sm:$0xf] %vm2556_vm12, %v2477_v12 }
 0x23e   : > { %v2479_v25 = vpop.permute.xlu1 %2478 }
 0x23f   : > { %2566 = vst.msk [vmem:[#allocation3 + $0x24] sm:$0xf] %vm2556_vm12, %v2479_v25 }
 0x240   : > { %v2509_v9 = vpop.permute.xlu0 %2508 }
 0x241   : > { %2581 = vst.msk [vmem:[#allocation3 + $0x60] sm:$0xf] %vm2556_vm12, %v2509_v9 }
 0x242   : > { %v2511_v21 = vpop.permute.xlu1 %2510 }
 0x243   : > { %2582 = vst.msk [vmem:[#allocation3 + $0x64] sm:$0xf] %vm2556_vm12, %v2511_v21 }
 0x244   : > { %v2481_v20 = vpop.permute.xlu0 %2480 }
 0x245   : > { %2567 = vst.msk [vmem:[#allocation3 + $0x28] sm:$0xf] %vm2556_vm12, %v2481_v20 }
 0x246   : > { %v2483_v37 = vpop.permute.xlu1 %2482  ;;  %v3840_v11 = vld [vmem:[#allocation3 + $0x20] sm:$0xff]  }
 0x247   : > { %2568 = vst.msk [vmem:[#allocation3 + $0x2c] sm:$0xf] %vm2556_vm12, %v2483_v37  ;;  %3764 = vmatprep.mubr.msk.bf16.mxu0 %vm2728_vm13, %v3840_v11 }
 0x248   : > { %v2513_v10 = vpop.permute.xlu0 %2512 }
 0x249   : > { %2583 = vst.msk [vmem:[#allocation3 + $0x68] sm:$0xf] %vm2556_vm12, %v2513_v10 }
 0x24a   : > { %v2515_v27 = vpop.permute.xlu1 %2514  ;;  %v3841_v16 = vld [vmem:[#allocation3 + $0x60] sm:$0xff]  }
 0x24b   : > { %2584 = vst.msk [vmem:[#allocation3 + $0x6c] sm:$0xf] %vm2556_vm12, %v2515_v27  ;;  %3780 = vmatprep.mubr.msk.bf16.mxu1 %vm2728_vm13, %v3841_v16 }
 0x24c   : > { %v1456_v49 = vpop.permute.xlu0 %1455 }
 0x24d   : > { %1540 = vst.msk [vmem:[#allocation3 + $0x30] sm:$0xf] %vm1527_vm8, %v1456_v49 }
 0x24e   : > { %v1458_v51 = vpop.permute.xlu1 %1457  ;;  %v3842_v18 = vld [vmem:[#allocation3 + $0x28] sm:$0xff]  }
 0x24f   : > { %1541 = vst.msk [vmem:[#allocation3 + $0x34] sm:$0xf] %vm1527_vm8, %v1458_v51  ;;  %3765 = vmatmul.mubr.msk.bf16.gmra.mxu0 %vm2728_vm13, %v3842_v18 }
 0x250   : > { %v1488_v50 = vpop.permute.xlu0 %1487 }
 0x251   : > { %1556 = vst.msk [vmem:[#allocation3 + $0x70] sm:$0xf] %vm1527_vm8, %v1488_v50 }
 0x252   : > { %v1490_v31 = vpop.permute.xlu1 %1489  ;;  %v3843_v38 = vld [vmem:[#allocation3 + $0x68] sm:$0xff]  }
 0x253   : > { %1557 = vst.msk [vmem:[#allocation3 + $0x74] sm:$0xf] %vm1527_vm8, %v1490_v31  ;;  %3781 = vmatmul.mubr.msk.bf16.gmra.mxu1 %vm2728_vm13, %v3843_v38 }
 0x254   : > { %v1460_v17 = vpop.permute.xlu0 %1459 }
 0x255   : > { %1542 = vst.msk [vmem:[#allocation3 + $0x38] sm:$0xf] %vm1527_vm8, %v1460_v17 }
 0x256   : > { %v1462_v54 = vpop.permute.xlu1 %1461 }
 0x257   : > { %1543 = vst.msk [vmem:[#allocation3 + $0x3c] sm:$0xf] %vm1527_vm8, %v1462_v54 }
 0x258   : > { %v1492_v39 = vpop.permute.xlu0 %1491 }
 0x259   : > { %1558 = vst.msk [vmem:[#allocation3 + $0x78] sm:$0xf] %vm1527_vm8, %v1492_v39 }
 0x25a   : > { %v1494_v44 = vpop.permute.xlu1 %1493 }
 0x25b   : > { %1559 = vst.msk [vmem:[#allocation3 + $0x7c] sm:$0xf] %vm1527_vm8, %v1494_v44 }
 0x25c   : > { %v1713_v32 = vpop.permute.xlu0 %1712 }
 0x25d   : > { %1797 = vst.msk [vmem:[#allocation3 + $0x30] sm:$0xf] %vm1784_vm9, %v1713_v32 }
 0x25e   : > { %v1715_v46 = vpop.permute.xlu1 %1714 }
 0x25f   : > { %1798 = vst.msk [vmem:[#allocation3 + $0x34] sm:$0xf] %vm1784_vm9, %v1715_v46 }
 0x260   : > { %v1745_v45 = vpop.permute.xlu0 %1744 }
 0x261   : > { %1813 = vst.msk [vmem:[#allocation3 + $0x70] sm:$0xf] %vm1784_vm9, %v1745_v45 }
 0x262   : > { %v1747_v47 = vpop.permute.xlu1 %1746 }
 0x263   : > { %1814 = vst.msk [vmem:[#allocation3 + $0x74] sm:$0xf] %vm1784_vm9, %v1747_v47 }
 0x264   : > { %v1717_v19 = vpop.permute.xlu0 %1716 }
 0x265   : > { %1799 = vst.msk [vmem:[#allocation3 + $0x38] sm:$0xf] %vm1784_vm9, %v1717_v19 }
 0x266   : > { %v1719_v63 = vpop.permute.xlu1 %1718 }
 0x267   : > { %1800 = vst.msk [vmem:[#allocation3 + $0x3c] sm:$0xf] %vm1784_vm9, %v1719_v63 }
 0x268   : > { %v1749_v48 = vpop.permute.xlu0 %1748 }
 0x269   : > { %1815 = vst.msk [vmem:[#allocation3 + $0x78] sm:$0xf] %vm1784_vm9, %v1749_v48 }
 0x26a   : > { %v1751_v52 = vpop.permute.xlu1 %1750 }
 0x26b   : > { %1816 = vst.msk [vmem:[#allocation3 + $0x7c] sm:$0xf] %vm1784_vm9, %v1751_v52 }
 0x26c   : > { %v1971_v33 = vpop.permute.xlu0 %1970 }
 0x26d   : > { %2055 = vst.msk [vmem:[#allocation3 + $0x30] sm:$0xf] %vm2042_vm10, %v1971_v33 }
 0x26e   : > { %v1973_v53 = vpop.permute.xlu1 %1972 }
 0x26f   : > { %2056 = vst.msk [vmem:[#allocation3 + $0x34] sm:$0xf] %vm2042_vm10, %v1973_v53 }
 0x270   : > { %v2003_v6 = vpop.permute.xlu0 %2002 }
 0x271   : > { %2071 = vst.msk [vmem:[#allocation3 + $0x70] sm:$0xf] %vm2042_vm10, %v2003_v6 }
 0x272   : > { %v2005_v57 = vpop.permute.xlu1 %2004 }
 0x273   : > { %2072 = vst.msk [vmem:[#allocation3 + $0x74] sm:$0xf] %vm2042_vm10, %v2005_v57 }
 0x274   : > { %v1975_v56 = vpop.permute.xlu0 %1974 }
 0x275   : > { %2057 = vst.msk [vmem:[#allocation3 + $0x38] sm:$0xf] %vm2042_vm10, %v1975_v56 }
 0x276   : > { %v1977_v59 = vpop.permute.xlu1 %1976 }
 0x277   : > { %2058 = vst.msk [vmem:[#allocation3 + $0x3c] sm:$0xf] %vm2042_vm10, %v1977_v59 }
 0x278   : > { %v2007_v22 = vpop.permute.xlu0 %2006 }
 0x279   : > { %2073 = vst.msk [vmem:[#allocation3 + $0x78] sm:$0xf] %vm2042_vm10, %v2007_v22 }
 0x27a   : > { %v2009_v24 = vpop.permute.xlu1 %2008 }
 0x27b   : > { %2074 = vst.msk [vmem:[#allocation3 + $0x7c] sm:$0xf] %vm2042_vm10, %v2009_v24  ;;  %v3758_v28 = vpop.f32.mrf.mxu0 }
 0x27c   : > { %v2228_v60 = vpop.permute.xlu0 %2227  ;;  %v2824_v5 = vadd.f32 %v3758_v28, %v4904_v61 }
 0x27d   : > { %2312 = vst.msk [vmem:[#allocation3 + $0x30] sm:$0xf] %vm2299_vm11, %v2228_v60  ;;  %v2815_v7 = vpop.f32.mrf.mxu0 }
 0x27e   : > { %v2230_v30 = vpop.permute.xlu1 %2229  ;;  %v2944_v23 = vmax.f32 %v2824_v5, 0.0  ;;  %v2816_v34 = vadd.f32 %v4904_v61, %v2815_v7 }
 0x27f   : > { %2313 = vst.msk [vmem:[#allocation3 + $0x34] sm:$0xf] %vm2299_vm11, %v2230_v30  ;;  %v3759_v41 = vpop.f32.mrf.mxu0  ;;  %v3774_v36 = vpop.f32.mrf.mxu1 }
 0x280   : > { %v2260_v29 = vpop.permute.xlu0 %2259  ;;  %2977 = vst.msk [vmem:[%s4914_s11 + $0x10] sm:$0xff] %vm2974_vm14, %v2944_v23  ;;  %v2942_v42 = vmax.f32 %v2816_v34, 0.0  ;;  %v2827_v35 = vadd.f32 %v3759_v41, %v4904_v61  ;;  %v2888_v43 = vadd.f32 %v3774_v36, %v4904_v61 }
 0x281   : > { %2328 = vst.msk [vmem:[#allocation3 + $0x70] sm:$0xf] %vm2299_vm11, %v2260_v29  ;;  %v2818_v62 = vpop.f32.mrf.mxu0  ;;  %v2879_v15 = vpop.f32.mrf.mxu1 }
 0x282   : > { %v2262_v2 = vpop.permute.xlu1 %2261  ;;  %2975 = vst.msk [vmem:[%s4914_s11] sm:$0xff] %vm2974_vm14, %v2942_v42  ;;  %v2945_v4 = vmax.f32 %v2827_v35, 0.0  ;;  %v2960_v13 = vmax.f32 %v2888_v43, 0.0  ;;  %v2819_v14 = vadd.f32 %v4904_v61, %v2818_v62  ;;  %v2880_v40 = vadd.f32 %v4904_v61, %v2879_v15 }
 0x283   : > { %2329 = vst.msk [vmem:[#allocation3 + $0x74] sm:$0xf] %vm2299_vm11, %v2262_v2  ;;  %v3775_v55 = vpop.f32.mrf.mxu1 }
 0x284   : > { %v2232_v0 = vpop.permute.xlu0 %2231  ;;  %2978 = vst.msk [vmem:[%s4914_s11 + $0x18] sm:$0xff] %vm2974_vm14, %v2945_v4  ;;  %2993 = vst.msk [vmem:[%s4914_s11 + $0x90] sm:$0xff] %vm2974_vm14, %v2960_v13  ;;  %v2943_v26 = vmax.f32 %v2819_v14, 0.0  ;;  %v2958_v3 = vmax.f32 %v2880_v40, 0.0  ;;  %v2891_v1 = vadd.f32 %v3775_v55, %v4904_v61 }
 0x285   : > { %2314 = vst.msk [vmem:[#allocation3 + $0x38] sm:$0xf] %vm2299_vm11, %v2232_v0  ;;  %v2882_v8 = vpop.f32.mrf.mxu1 }
 0x286   : > { %v2234_v12 = vpop.permute.xlu1 %2233  ;;  %2976 = vst.msk [vmem:[%s4914_s11 + $0x8] sm:$0xff] %vm2974_vm14, %v2943_v26  ;;  %2991 = vst.msk [vmem:[%s4914_s11 + $0x80] sm:$0xff] %vm2974_vm14, %v2958_v3  ;;  %v2961_v9 = vmax.f32 %v2891_v1, 0.0  ;;  %v2883_v25 = vadd.f32 %v4904_v61, %v2882_v8 }
 0x287   : > { %2315 = vst.msk [vmem:[#allocation3 + $0x3c] sm:$0xf] %vm2299_vm11, %v2234_v12 }
 0x288   : > { %v2264_v58 = vpop.permute.xlu0 %2263  ;;  %2994 = vst.msk [vmem:[%s4914_s11 + $0x98] sm:$0xff] %vm2974_vm14, %v2961_v9  ;;  %v2959_v21 = vmax.f32 %v2883_v25, 0.0 }
 0x289   : > { %2330 = vst.msk [vmem:[#allocation3 + $0x78] sm:$0xf] %vm2299_vm11, %v2264_v58 }
 0x28a   : > { %v2266_v10 = vpop.permute.xlu1 %2265  ;;  %2992 = vst.msk [vmem:[%s4914_s11 + $0x88] sm:$0xff] %vm2974_vm14, %v2959_v21 }
 0x28b   : > { %2331 = vst.msk [vmem:[#allocation3 + $0x7c] sm:$0xf] %vm2299_vm11, %v2266_v10 }
 0x28c   : > { %v2485_v20 = vpop.permute.xlu0 %2484 }
 0x28d   : > { %2569 = vst.msk [vmem:[#allocation3 + $0x30] sm:$0xf] %vm2556_vm12, %v2485_v20 }
 0x28e   : > { %v2487_v11 = vpop.permute.xlu1 %2486 }
 0x28f   : > { %2570 = vst.msk [vmem:[#allocation3 + $0x34] sm:$0xf] %vm2556_vm12, %v2487_v11 }
 0x290   : > { %v2517_v37 = vpop.permute.xlu0 %2516 }
 0x291   : > { %2585 = vst.msk [vmem:[#allocation3 + $0x70] sm:$0xf] %vm2556_vm12, %v2517_v37 }
 0x292   : > { %v2519_v27 = vpop.permute.xlu1 %2518 }
 0x293   : > { %2586 = vst.msk [vmem:[#allocation3 + $0x74] sm:$0xf] %vm2556_vm12, %v2519_v27 }
 0x294   : > { %v2489_v49 = vpop.permute.xlu0 %2488 }
 0x295   : > { %2571 = vst.msk [vmem:[#allocation3 + $0x38] sm:$0xf] %vm2556_vm12, %v2489_v49 }
 0x296   : > { %v2491_v50 = vpop.permute.xlu1 %2490  ;;  %v3844_v51 = vld [vmem:[#allocation3 + $0x30] sm:$0xff]  }
 0x297   : > { %2572 = vst.msk [vmem:[#allocation3 + $0x3c] sm:$0xf] %vm2556_vm12, %v2491_v50  ;;  %3768 = vmatprep.mubr.msk.bf16.mxu0 %vm2728_vm13, %v3844_v51 }
 0x298   : > { %v2521_v16 = vpop.permute.xlu0 %2520 }
 0x299   : > { %2587 = vst.msk [vmem:[#allocation3 + $0x78] sm:$0xf] %vm2556_vm12, %v2521_v16 }
 0x29a   : > { %v2523_v18 = vpop.permute.xlu1 %2522  ;;  %v3845_v17 = vld [vmem:[#allocation3 + $0x70] sm:$0xff]  }
 0x29b   : > { %2588 = vst.msk [vmem:[#allocation3 + $0x7c] sm:$0xf] %vm2556_vm12, %v2523_v18  ;;  %3784 = vmatprep.mubr.msk.bf16.mxu1 %vm2728_vm13, %v3845_v17 }
 0x29e   : > { %v3846_v31 = vld [vmem:[#allocation3 + $0x38] sm:$0xff]  }
 0x29f   : > { %3769 = vmatmul.mubr.msk.bf16.gmra.mxu0 %vm2728_vm13, %v3846_v31 }
 0x2a2   : > { %v3847_v38 = vld [vmem:[#allocation3 + $0x78] sm:$0xff]  }
 0x2a3   : > { %3785 = vmatmul.mubr.msk.bf16.gmra.mxu1 %vm2728_vm13, %v3847_v38 }
 0x2c3   : > { %v3762_v39 = vpop.f32.mrf.mxu0 }
 0x2c4   : > { %v2840_v54 = vadd.f32 %v3762_v39, %v4904_v61 }
 0x2c5   : > { %v2831_v32 = vpop.f32.mrf.mxu0 }
 0x2c6   : > { %v2948_v44 = vmax.f32 %v2840_v54, 0.0  ;;  %v2832_v45 = vadd.f32 %v4904_v61, %v2831_v32 }
 0x2c7   : > { %v3763_v46 = vpop.f32.mrf.mxu0  ;;  %v3778_v19 = vpop.f32.mrf.mxu1 }
 0x2c8   : > { %2981 = vst.msk [vmem:[%s4914_s11 + $0x30] sm:$0xff] %vm2974_vm14, %v2948_v44  ;;  %v2946_v47 = vmax.f32 %v2832_v45, 0.0  ;;  %v2843_v48 = vadd.f32 %v3763_v46, %v4904_v61  ;;  %v2904_v63 = vadd.f32 %v3778_v19, %v4904_v61 }
 0x2c9   : > { %v2834_v33 = vpop.f32.mrf.mxu0  ;;  %v2895_v52 = vpop.f32.mrf.mxu1 }
 0x2ca   : > { %2979 = vst.msk [vmem:[%s4914_s11 + $0x20] sm:$0xff] %vm2974_vm14, %v2946_v47  ;;  %v2949_v6 = vmax.f32 %v2843_v48, 0.0  ;;  %v2964_v53 = vmax.f32 %v2904_v63, 0.0  ;;  %v2835_v56 = vadd.f32 %v4904_v61, %v2834_v33  ;;  %v2896_v57 = vadd.f32 %v4904_v61, %v2895_v52 }
 0x2cb   : > { %v3779_v22 = vpop.f32.mrf.mxu1 }
 0x2cc   : > { %2982 = vst.msk [vmem:[%s4914_s11 + $0x38] sm:$0xff] %vm2974_vm14, %v2949_v6  ;;  %2997 = vst.msk [vmem:[%s4914_s11 + $0xb0] sm:$0xff] %vm2974_vm14, %v2964_v53  ;;  %v2947_v59 = vmax.f32 %v2835_v56, 0.0  ;;  %v2962_v60 = vmax.f32 %v2896_v57, 0.0  ;;  %v2907_v24 = vadd.f32 %v3779_v22, %v4904_v61 }
 0x2cd   : > { %v2898_v28 = vpop.f32.mrf.mxu1 }
 0x2ce   : > { %2980 = vst.msk [vmem:[%s4914_s11 + $0x28] sm:$0xff] %vm2974_vm14, %v2947_v59  ;;  %2995 = vst.msk [vmem:[%s4914_s11 + $0xa0] sm:$0xff] %vm2974_vm14, %v2962_v60  ;;  %v2965_v5 = vmax.f32 %v2907_v24, 0.0  ;;  %v2899_v29 = vadd.f32 %v4904_v61, %v2898_v28 }
 0x2d0   : > { %2998 = vst.msk [vmem:[%s4914_s11 + $0xb8] sm:$0xff] %vm2974_vm14, %v2965_v5  ;;  %v2963_v30 = vmax.f32 %v2899_v29, 0.0 }
 0x2d2   : > { %2996 = vst.msk [vmem:[%s4914_s11 + $0xa8] sm:$0xff] %vm2974_vm14, %v2963_v30 }
 0x30f   : > { %v3766_v7 = vpop.f32.mrf.mxu0 }
 0x310   : > { %v2856_v23 = vadd.f32 %v3766_v7, %v4904_v61 }
 0x311   : > { %v2847_v34 = vpop.f32.mrf.mxu0 }
 0x312   : > { %v2952_v41 = vmax.f32 %v2856_v23, 0.0  ;;  %v2848_v36 = vadd.f32 %v4904_v61, %v2847_v34 }
 0x313   : > { %v3767_v42 = vpop.f32.mrf.mxu0  ;;  %v3782_v35 = vpop.f32.mrf.mxu1 }
 0x314   : > { %2985 = vst.msk [vmem:[%s4914_s11 + $0x50] sm:$0xff] %vm2974_vm14, %v2952_v41  ;;  %v2950_v43 = vmax.f32 %v2848_v36, 0.0  ;;  %v2859_v0 = vadd.f32 %v3767_v42, %v4904_v61  ;;  %v2920_v2 = vadd.f32 %v3782_v35, %v4904_v61 }
 0x315   : > { %v2850_v62 = vpop.f32.mrf.mxu0  ;;  %v2911_v4 = vpop.f32.mrf.mxu1 }
 0x316   : > { %2983 = vst.msk [vmem:[%s4914_s11 + $0x40] sm:$0xff] %vm2974_vm14, %v2950_v43  ;;  %v2953_v13 = vmax.f32 %v2859_v0, 0.0  ;;  %v2968_v14 = vmax.f32 %v2920_v2, 0.0  ;;  %v2851_v15 = vadd.f32 %v4904_v61, %v2850_v62  ;;  %v2912_v40 = vadd.f32 %v4904_v61, %v2911_v4 }
 0x317   : > { %v3783_v26 = vpop.f32.mrf.mxu1 }
 0x318   : > { %2986 = vst.msk [vmem:[%s4914_s11 + $0x58] sm:$0xff] %vm2974_vm14, %v2953_v13  ;;  %3001 = vst.msk [vmem:[%s4914_s11 + $0xd0] sm:$0xff] %vm2974_vm14, %v2968_v14  ;;  %v2951_v55 = vmax.f32 %v2851_v15, 0.0  ;;  %v2966_v58 = vmax.f32 %v2912_v40, 0.0  ;;  %v2923_v3 = vadd.f32 %v3783_v26, %v4904_v61 }
 0x319   : > { %v2914_v1 = vpop.f32.mrf.mxu1 }
 0x31a   : > { %2984 = vst.msk [vmem:[%s4914_s11 + $0x48] sm:$0xff] %vm2974_vm14, %v2951_v55  ;;  %2999 = vst.msk [vmem:[%s4914_s11 + $0xc0] sm:$0xff] %vm2974_vm14, %v2966_v58  ;;  %v2969_v12 = vmax.f32 %v2923_v3, 0.0  ;;  %v2915_v8 = vadd.f32 %v4904_v61, %v2914_v1 }
 0x31c   : > { %3002 = vst.msk [vmem:[%s4914_s11 + $0xd8] sm:$0xff] %vm2974_vm14, %v2969_v12  ;;  %v2967_v9 = vmax.f32 %v2915_v8, 0.0 }
 0x31e   : > { %3000 = vst.msk [vmem:[%s4914_s11 + $0xc8] sm:$0xff] %vm2974_vm14, %v2967_v9 }
 0x35f   : > { %v3770_v25 = vpop.f32.mrf.mxu0 }
 0x360   : > { %v2872_v20 = vadd.f32 %v3770_v25, %v4904_v61 }
 0x361   : > { %v2863_v21 = vpop.f32.mrf.mxu0 }
 0x362   : > { %v2956_v10 = vmax.f32 %v2872_v20, 0.0  ;;  %v2864_v37 = vadd.f32 %v4904_v61, %v2863_v21 }
 0x363   : > { %v3771_v11 = vpop.f32.mrf.mxu0  ;;  %v3786_v49 = vpop.f32.mrf.mxu1 }
 0x364   : > { %2989 = vst.msk [vmem:[%s4914_s11 + $0x70] sm:$0xff] %vm2974_vm14, %v2956_v10  ;;  %v2954_v27 = vmax.f32 %v2864_v37, 0.0  ;;  %v2875_v16 = vadd.f32 %v3771_v11, %v4904_v61  ;;  %v2936_v50 = vadd.f32 %v3786_v49, %v4904_v61 }
 0x365   : > { %v2866_v51 = vpop.f32.mrf.mxu0  ;;  %v2927_v18 = vpop.f32.mrf.mxu1 }
 0x366   : > { %2987 = vst.msk [vmem:[%s4914_s11 + $0x60] sm:$0xff] %vm2974_vm14, %v2954_v27  ;;  %v2957_v17 = vmax.f32 %v2875_v16, 0.0  ;;  %v2972_v31 = vmax.f32 %v2936_v50, 0.0  ;;  %v2867_v38 = vadd.f32 %v4904_v61, %v2866_v51  ;;  %v2928_v39 = vadd.f32 %v4904_v61, %v2927_v18 }
 0x367   : > { %v3787_v54 = vpop.f32.mrf.mxu1 }
 0x368   : > { %2990 = vst.msk [vmem:[%s4914_s11 + $0x78] sm:$0xff] %vm2974_vm14, %v2957_v17  ;;  %3005 = vst.msk [vmem:[%s4914_s11 + $0xf0] sm:$0xff] %vm2974_vm14, %v2972_v31  ;;  %v2955_v32 = vmax.f32 %v2867_v38, 0.0  ;;  %v2970_v44 = vmax.f32 %v2928_v39, 0.0  ;;  %v2939_v45 = vadd.f32 %v3787_v54, %v4904_v61 }
 0x369   : > { %v2930_v46 = vpop.f32.mrf.mxu1 }
 0x36a   : > { %2988 = vst.msk [vmem:[%s4914_s11 + $0x68] sm:$0xff] %vm2974_vm14, %v2955_v32  ;;  %3003 = vst.msk [vmem:[%s4914_s11 + $0xe0] sm:$0xff] %vm2974_vm14, %v2970_v44  ;;  %v2973_v19 = vmax.f32 %v2939_v45, 0.0  ;;  %v2931_v47 = vadd.f32 %v4904_v61, %v2930_v46 }
 0x36c   : > { %3006 = vst.msk [vmem:[%s4914_s11 + $0xf8] sm:$0xff] %vm2974_vm14, %v2973_v19  ;;  %v2971_v48 = vmax.f32 %v2931_v47, 0.0 }
 0x36e   : > { %3004 = vst.msk [vmem:[%s4914_s11 + $0xe8] sm:$0xff] %vm2974_vm14, %v2971_v48 }
 0x36f PF: > { %s13_s14 = sadd.s32 1, %s3870_s14   ;;  %s5043_s12 = smov %s3866_s13 }
 0x370   : > { %p10_p5 = scmp.ge.s32.totalorder %s13_s14, 4   ;;  %s5044_s13 = smov %s5046_s15 }
 0x372   :  { %12 = sbr.rel (!%p10_p5) target bundleno = 2 (0x2), region = 81 }

</bundles_post_ra>
